<compile_context>
chip_gen: v7x
topology: tpu7x:2x2x1
jax: 0.10.0
libtpu: 0.0.40
codegen_flags: <defaults>
</compile_context>

<pallas_src>
import math
import functools

import jax
import jax.numpy as jnp
from jax.experimental import pallas as pl
from jax.experimental.pallas import tpu as pltpu


def _round_up(v, m):
    return (v + m - 1) // m * m


# ----------------------------- Pallas kernel ---------------------------------

def _cvi_kernel(p00_ref, p01_ref, p10_ref, p11_ref, w_ref, b_ref, o_ref, patch_ref,
                *, before, after, k, TH, Wo, Cin, Cout):
    # p??_ref : (Hp2, Wp2, Cin) bf16  stride-2 parity planes of the padded input
    #           (block index constant along the Ho-tile axis -> resident, no re-DMA)
    # w_ref   : (K, Coutp) bf16       weights, K ordered (kh, kw, ci), Cout zero-padded
    # b_ref   : (1, Coutp) f32
    # o_ref   : (TH*Wo, Coutp) f32    lane-dense (Coutp % 128 == 0) output tile
    # patch_ref: VMEM scratch (TH, Wo, K) bf16 -- fused-im2col staging tile
    planes = (p00_ref, p01_ref, p10_ref, p11_ref)
    ho0 = pl.multiple_of(pl.program_id(1) * TH, TH)

    # Fused im2col: tap (kh, kw) of the stride-2 conv is a window of parity plane
    # (kh % 2, kw % 2) shifted by (kh // 2, kw // 2).  Windows are *ref* slices
    # (zero-cost views); the 'before' activation is fused into the copy.
    for kh in range(k):
        for kw in range(k):
            pr = planes[(kh % 2) * 2 + (kw % 2)]
            dy, dx = kh // 2, kw // 2
            q = pr[pl.ds(ho0 + dy, TH), dx:dx + Wo, :]
            if before == "ReLU":
                q = jnp.maximum(q, 0)
            elif before == "LReLU":
                q = jnp.where(q >= 0, q, 0.2 * q)
            t = kh * k + kw
            # TODO(synk): on v5e, group the 4 taps sharing a parity plane into one
            # 4*Cin-wide lane store (needs a matching K reorder) to relieve the
            # single vst slot; with small Cin these stripe stores are masked.
            patch_ref[:, :, t * Cin:(t + 1) * Cin] = q.astype(patch_ref.dtype)

    M = TH * Wo
    K = k * k * Cin
    # Free reshape when Wo % 8 == 0 (sublane tiles line up); the wrapper picks tiles so.
    p = patch_ref[...].reshape(M, K)
    acc = jnp.dot(p, w_ref[...], preferred_element_type=jnp.float32)   # bf16 MXU, f32 acc
    acc = acc + b_ref[...]                                             # (1, Coutp) broadcast

    if after == "Tanh":
        acc = jnp.tanh(acc)
    elif after == "sigmoid":
        acc = 0.5 * (jnp.tanh(0.5 * acc) + 1.0)          # exact sigmoid via EUP tanh
    elif after == "softmax":                             # nn.Softmax(dim=1): over Cout
        lane = jax.lax.broadcasted_iota(jnp.int32, acc.shape, 1)
        acc = jnp.where(lane < Cout, acc, -jnp.inf)      # keep padded channels out
        m = jnp.max(acc, axis=-1, keepdims=True)
        e = jnp.exp(acc - m)
        acc = e / jnp.sum(e, axis=-1, keepdims=True)     # exact divide: rows sum to 1
    # TODO(synk): after == 'BN' (batch statistics), 'maxPooling' and 'flatten' are not
    # fused into this kernel.

    o_ref[...] = acc.astype(o_ref.dtype)


# ------------------------------ tiling helpers --------------------------------

def _pick_ho_tile(Ho, Wo, K):
    """Largest divisor of Ho whose bf16 patch tile fits ~2 MiB with a sublane-aligned
    output block, preferring >= 2 tiles per image (pipelining / v7x megacore)."""
    budget = 2 << 20
    cands = [th for th in range(1, Ho + 1)
             if Ho % th == 0 and (th == Ho or (th * Wo) % 8 == 0)]
    fits = [th for th in cands if th * Wo * K * 2 <= budget]
    th = max(fits) if fits else min(cands)
    if th == Ho:
        half = Ho // 2
        if Ho % 2 == 0 and half >= 1 and (half * Wo) % 8 == 0 and half * Wo * K * 2 <= budget:
            th = half
    return th


def _vmem_limit_bytes(Hp2, Wp2, Cin, TH, Wo, K, Coutp):
    """Conservative per-step footprint (tile-padded, double-buffered pipeline blocks)
    with headroom, clamped to [32 MiB, 64 MiB] (v7x physical VMEM per TC)."""
    lane, sub = 128, 8
    plane = Hp2 * _round_up(Wp2, 2 * sub) * _round_up(Cin, lane) * 2     # bf16
    patch = _round_up(TH * Wo, 2 * sub) * _round_up(K, lane) * 2         # bf16 scratch
    wmat = _round_up(K, 2 * sub) * _round_up(Coutp, lane) * 2            # bf16
    bias = sub * _round_up(Coutp, lane) * 4
    out = _round_up(TH * Wo, sub) * _round_up(Coutp, lane) * 4
    per_step = 2 * (4 * plane + wmat + bias + out) + patch
    est = 2 * per_step + (8 << 20)
    return int(min(max(est, 32 << 20), 64 << 20))


# ------------------------------ pallas_call wrapper ----------------------------

def _cvi_forward(planes, w_mat, bias, *, before, after, k, Ho, Wo, TH, Cin, Cout, Coutp):
    N, Hp2, Wp2, _ = planes[0].shape
    K = Cin * k * k
    n_tiles = Ho // TH
    Mt = TH * Wo

    plane_spec = pl.BlockSpec((None, Hp2, Wp2, Cin), lambda n, t: (n, 0, 0, 0))
    kern = functools.partial(_cvi_kernel, before=before, after=after,
                             k=k, TH=TH, Wo=Wo, Cin=Cin, Cout=Cout)
    return pl.pallas_call(
        kern,
        out_shape=jax.ShapeDtypeStruct((N, Ho * Wo, Coutp), jnp.float32),
        grid_spec=pltpu.PrefetchScalarGridSpec(
            num_scalar_prefetch=0,
            grid=(N, n_tiles),
            in_specs=[plane_spec, plane_spec, plane_spec, plane_spec,
                      # TODO(synk): weight/bias blocks are constant -> single-buffer
                      # them (pl.Buffered(1)) when Cin*k*k / Cout get large.
                      pl.BlockSpec((K, Coutp), lambda n, t: (0, 0)),
                      pl.BlockSpec((1, Coutp), lambda n, t: (0, 0))],
            out_specs=pl.BlockSpec((None, Mt, Coutp), lambda n, t: (n, t, 0)),
            scratch_shapes=[pltpu.VMEM((TH, Wo, K), jnp.bfloat16)],
        ),
        compiler_params=pltpu.CompilerParams(
            dimension_semantics=("parallel", "parallel"),
            vmem_limit_bytes=_vmem_limit_bytes(Hp2, Wp2, Cin, TH, Wo, K, Coutp)),
    )(*planes, w_mat, bias)


@functools.partial(jax.jit,
                   static_argnames=("before", "after", "k", "s", "p", "cout", "coutp"))
def _cvi_apply(x, w_mat, bias, *, before, after, k, s, p, cout, coutp):
    N, Cin, H, W = x.shape
    Ho = (H + 2 * p - k) // s + 1
    Wo = (W + 2 * p - k) // s + 1
    # NCHW -> NHWC, cast to bf16 (halves plane DMA bytes), zero-pad, and split into
    # the 4 stride-2 parity planes.  Under jit this fuses into one XLA pass over x;
    # total bytes handed to the kernel == padded input bytes (no 16x patch inflation).
    xh = jnp.transpose(x, (0, 2, 3, 1)).astype(jnp.bfloat16)
    xp = jnp.pad(xh, ((0, 0), (p, p), (p, p), (0, 0)))
    planes = [xp[:, py::2, px::2, :] for py in (0, 1) for px in (0, 1)]

    TH = _pick_ho_tile(Ho, Wo, Cin * k * k)
    out = _cvi_forward(planes, w_mat, bias, before=before, after=after,
                       k=k, Ho=Ho, Wo=Wo, TH=TH, Cin=Cin, Cout=cout, Coutp=coutp)
    out = out.reshape(N, Ho, Wo, coutp)[..., :cout]    # drop the lane padding
    return jnp.transpose(out, (0, 3, 1, 2))            # small output back to NCHW


# ------------------------------- Cvi module -----------------------------------

def _orthogonal_init(key, rows, cols, gain):
    """Replicates torch.nn.init.orthogonal_ semantics (rows x cols, row-orthonormal)."""
    n, m = (rows, cols) if rows >= cols else (cols, rows)
    a = jax.random.normal(key, (n, m), dtype=jnp.float32)
    q, r = jnp.linalg.qr(a)
    q = q * jnp.sign(jnp.diagonal(r))[None, :]
    if rows < cols:
        q = q.T
    return gain * q[:rows, :cols]


class CviPallas:
    def __init__(self, in_channels, out_channels, before=None, after=False,
                 kernel_size=4, stride=2, padding=1, dilation=1, groups=1, bias=True,
                 key=None):
        assert key is not None
        assert dilation == 1 and groups == 1, "dilation/groups not supported"
        if after in ("BN", "maxPooling", "flatten"):
            # TODO(synk): BatchNorm2d / MaxPool2d / Flatten 'after' modes not implemented.
            raise NotImplementedError(f"after={after!r} not supported in Pallas port")
        self.cin, self.cout = in_channels, out_channels
        self.coutp = _round_up(out_channels, 128)       # lane-dense padded Cout
        self.k, self.s, self.p = kernel_size, stride, padding
        self.before, self.after = before, after
        # orthogonal init with gain sqrt(2), bias = 0 (weights_init('orthogonal'))
        K = in_channels * kernel_size * kernel_size
        w2d = _orthogonal_init(key, out_channels, K, math.sqrt(2.0))   # (Cout, K)
        self.weight = w2d.reshape(out_channels, in_channels, kernel_size, kernel_size)
        # (K, Coutp), K ordered (kh, kw, ci) to match the in-kernel im2col; bf16 for
        # the MXU; Cout zero-padded to a multiple of 128 for lane-dense stores.
        wk = jnp.transpose(self.weight, (2, 3, 1, 0)).reshape(K, out_channels)
        self.w_mat = jnp.pad(wk, ((0, 0), (0, self.coutp - out_channels))
                             ).astype(jnp.bfloat16)
        self.bias = jnp.zeros((1, self.coutp), jnp.float32)

    def __call__(self, x):  # x: (N, Cin, H, W)
        N, Cin, H, W = x.shape
        assert Cin == self.cin
        assert self.s == 2 and self.k % 2 == 0, \
            "fused parity-plane im2col assumes stride 2, even k"
        assert (H + 2 * self.p) % 2 == 0 and (W + 2 * self.p) % 2 == 0
        return _cvi_apply(x, self.w_mat, self.bias,
                          before=self.before, after=self.after,
                          k=self.k, s=self.s, p=self.p,
                          cout=self.cout, coutp=self.coutp)


# --------------------------------- main ---------------------------------------

def _ref_forward(mod, x):
    """Pure-JAX f32 reference (lax conv)."""
    h = x
    if mod.before == "ReLU":
        h = jnp.maximum(h, 0.0)
    elif mod.before == "LReLU":
        h = jnp.where(h >= 0, h, 0.2 * h)
    y = jax.lax.conv_general_dilated(
        h, mod.weight, window_strides=(mod.s, mod.s),
        padding=[(mod.p, mod.p), (mod.p, mod.p)],
        dimension_numbers=("NCHW", "OIHW", "NCHW"))
    y = y + mod.bias[:, :mod.cout].reshape(1, mod.cout, 1, 1)
    if mod.after == "Tanh":
        y = jnp.tanh(y)
    elif mod.after == "sigmoid":
        y = jax.nn.sigmoid(y)
    elif mod.after == "softmax":
        y = jax.nn.softmax(y, axis=1)
    return y


def _ref_forward_bf16(mod, x):
    """bf16-matched reference (bf16 inputs/weights, f32 accumulate) for a tight check."""
    h = x.astype(jnp.bfloat16)
    if mod.before == "ReLU":
        h = jnp.maximum(h, 0)
    elif mod.before == "LReLU":
        h = jnp.where(h >= 0, h, 0.2 * h)
    y = jax.lax.conv_general_dilated(
        h, mod.weight.astype(jnp.bfloat16), window_strides=(mod.s, mod.s),
        padding=[(mod.p, mod.p), (mod.p, mod.p)],
        dimension_numbers=("NCHW", "OIHW", "NCHW"),
        preferred_element_type=jnp.float32)
    y = y + mod.bias[:, :mod.cout].reshape(1, mod.cout, 1, 1)
    if mod.after == "Tanh":
        y = jnp.tanh(y)
    elif mod.after == "sigmoid":
        y = jax.nn.sigmoid(y)
    elif mod.after == "softmax":
        y = jax.nn.softmax(y, axis=1)
    return y


if __name__ == "__main__":
    key = jax.random.PRNGKey(0)
    kx, k1, k2, k3, k4 = jax.random.split(key, 5)

    x = jax.random.normal(kx, (2, 4, 16, 16), dtype=jnp.float32)  # NCHW

    configs = [
        dict(),                                    # plain Cvi (k=4, s=2, p=1)
        dict(before="LReLU", after="Tanh"),        # fused pre/post activations
        dict(before="ReLU", after="sigmoid"),
        dict(after="softmax"),
    ]
    for wkey, cfg in zip((k1, k2, k3, k4), configs):
        m = CviPallas(4, 8, key=wkey, **cfg)
        y = jax.block_until_ready(m(x))
        assert y.shape == (2, 8, 8, 8), (y.shape, cfg)
        # loose check vs the f32 reference (covers the wrapper-side bf16 input cast)
        r32 = _ref_forward(m, x)
        assert jnp.allclose(y, r32, rtol=5e-2, atol=5e-2), cfg
        # tighter check vs a bf16-matched reference (catches layout/indexing bugs)
        rbf = _ref_forward_bf16(m, x)
        assert jnp.allclose(y, rbf, rtol=1e-2, atol=1e-2), cfg

    print("KERNEL_OK")
</pallas_src>

<mosaic_0001>
module attributes {stable_mosaic.version = 11 : i64} {
  func.func @_cvi_kernel(%arg0: i32, %arg1: i32, %arg2: memref<1x9x9x4xbf16, #tpu.memory_space<vmem>>, %arg3: memref<1x9x9x4xbf16, #tpu.memory_space<vmem>>, %arg4: memref<1x9x9x4xbf16, #tpu.memory_space<vmem>>, %arg5: memref<1x9x9x4xbf16, #tpu.memory_space<vmem>>, %arg6: memref<64x128xbf16, #tpu.memory_space<vmem>>, %arg7: memref<1x128xf32, #tpu.memory_space<vmem>>, %arg8: memref<1x32x128xf32, #tpu.memory_space<vmem>>, %arg9: memref<4x8x64xbf16, #tpu.memory_space<vmem>>) attributes {dimension_semantics = [#tpu.dimension_semantics<parallel>, #tpu.dimension_semantics<parallel>], iteration_bounds = array<i64: 2, 2>, scalar_prefetch = 0 : i64, scratch_operands = 1 : i64, tpu.core_type = #tpu.core_type<tc>, window_params = [{transform_indices = @transform_0, window_bounds = array<i64: 1, 9, 9, 4>}, {transform_indices = @transform_1, window_bounds = array<i64: 1, 9, 9, 4>}, {transform_indices = @transform_2, window_bounds = array<i64: 1, 9, 9, 4>}, {transform_indices = @transform_3, window_bounds = array<i64: 1, 9, 9, 4>}, {pipeline_mode = #tpu.pipeline_mode<synchronous>, transform_indices = @transform_4, window_bounds = array<i64: 64, 128>}, {pipeline_mode = #tpu.pipeline_mode<synchronous>, transform_indices = @transform_5, window_bounds = array<i64: 1, 128>}, {transform_indices = @transform_6, window_bounds = array<i64: 1, 32, 128>}]} {
    %c4_i32 = arith.constant 4 : i32
    %0 = arith.muli %arg1, %c4_i32 : i32
    %1 = tpu.assume_multiple %0, 4 : i32
    %c0_i32 = arith.constant 0 : i32
    %2 = arith.addi %1, %c0_i32 : i32
    %c0 = arith.constant 0 : index
    %3 = arith.index_cast %2 : i32 to index
    %c0_0 = arith.constant 0 : index
    %c0_1 = arith.constant 0 : index
    %4 = vector.load %arg2[%c0, %3, %c0_0, %c0_1] : memref<1x9x9x4xbf16, #tpu.memory_space<vmem>>, vector<1x4x8x4xbf16>
    %5 = vector.shape_cast %4 : vector<1x4x8x4xbf16> to vector<4x8x4xbf16>
    %c0_2 = arith.constant 0 : index
    %c0_3 = arith.constant 0 : index
    %c0_4 = arith.constant 0 : index
    %6 = vector.load %arg9[%c0_2, %c0_3, %c0_4] : memref<4x8x64xbf16, #tpu.memory_space<vmem>>, vector<4x8x4xbf16>
    tpu.vector_store %arg9[%c0_2, %c0_3, %c0_4], %5 {strides = array<i32>} : memref<4x8x64xbf16, #tpu.memory_space<vmem>>, vector<4x8x4xbf16>,
    %c0_i32_5 = arith.constant 0 : i32
    %7 = arith.addi %1, %c0_i32_5 : i32
    %c0_6 = arith.constant 0 : index
    %8 = arith.index_cast %7 : i32 to index
    %c0_7 = arith.constant 0 : index
    %c0_8 = arith.constant 0 : index
    %9 = vector.load %arg3[%c0_6, %8, %c0_7, %c0_8] : memref<1x9x9x4xbf16, #tpu.memory_space<vmem>>, vector<1x4x8x4xbf16>
    %10 = vector.shape_cast %9 : vector<1x4x8x4xbf16> to vector<4x8x4xbf16>
    %c0_9 = arith.constant 0 : index
    %c0_10 = arith.constant 0 : index
    %c4 = arith.constant 4 : index
    %11 = vector.load %arg9[%c0_9, %c0_10, %c4] : memref<4x8x64xbf16, #tpu.memory_space<vmem>>, vector<4x8x4xbf16>
    tpu.vector_store %arg9[%c0_9, %c0_10, %c4], %10 {strides = array<i32>} : memref<4x8x64xbf16, #tpu.memory_space<vmem>>, vector<4x8x4xbf16>,
    %c0_i32_11 = arith.constant 0 : i32
    %12 = arith.addi %1, %c0_i32_11 : i32
    %c0_12 = arith.constant 0 : index
    %13 = arith.index_cast %12 : i32 to index
    %c1 = arith.constant 1 : index
    %c0_13 = arith.constant 0 : index
    %14 = vector.load %arg2[%c0_12, %13, %c1, %c0_13] : memref<1x9x9x4xbf16, #tpu.memory_space<vmem>>, vector<1x4x8x4xbf16>
    %15 = vector.shape_cast %14 : vector<1x4x8x4xbf16> to vector<4x8x4xbf16>
    %c0_14 = arith.constant 0 : index
    %c0_15 = arith.constant 0 : index
    %c8 = arith.constant 8 : index
    %16 = vector.load %arg9[%c0_14, %c0_15, %c8] : memref<4x8x64xbf16, #tpu.memory_space<vmem>>, vector<4x8x4xbf16>
    tpu.vector_store %arg9[%c0_14, %c0_15, %c8], %15 {strides = array<i32>} : memref<4x8x64xbf16, #tpu.memory_space<vmem>>, vector<4x8x4xbf16>,
    %c0_i32_16 = arith.constant 0 : i32
    %17 = arith.addi %1, %c0_i32_16 : i32
    %c0_17 = arith.constant 0 : index
    %18 = arith.index_cast %17 : i32 to index
    %c1_18 = arith.constant 1 : index
    %c0_19 = arith.constant 0 : index
    %19 = vector.load %arg3[%c0_17, %18, %c1_18, %c0_19] : memref<1x9x9x4xbf16, #tpu.memory_space<vmem>>, vector<1x4x8x4xbf16>
    %20 = vector.shape_cast %19 : vector<1x4x8x4xbf16> to vector<4x8x4xbf16>
    %c0_20 = arith.constant 0 : index
    %c0_21 = arith.constant 0 : index
    %c12 = arith.constant 12 : index
    %21 = vector.load %arg9[%c0_20, %c0_21, %c12] : memref<4x8x64xbf16, #tpu.memory_space<vmem>>, vector<4x8x4xbf16>
    tpu.vector_store %arg9[%c0_20, %c0_21, %c12], %20 {strides = array<i32>} : memref<4x8x64xbf16, #tpu.memory_space<vmem>>, vector<4x8x4xbf16>,
    %c0_i32_22 = arith.constant 0 : i32
    %22 = arith.addi %1, %c0_i32_22 : i32
    %c0_23 = arith.constant 0 : index
    %23 = arith.index_cast %22 : i32 to index
    %c0_24 = arith.constant 0 : index
    %c0_25 = arith.constant 0 : index
    %24 = vector.load %arg4[%c0_23, %23, %c0_24, %c0_25] : memref<1x9x9x4xbf16, #tpu.memory_space<vmem>>, vector<1x4x8x4xbf16>
    %25 = vector.shape_cast %24 : vector<1x4x8x4xbf16> to vector<4x8x4xbf16>
    %c0_26 = arith.constant 0 : index
    %c0_27 = arith.constant 0 : index
    %c16 = arith.constant 16 : index
    %26 = vector.load %arg9[%c0_26, %c0_27, %c16] : memref<4x8x64xbf16, #tpu.memory_space<vmem>>, vector<4x8x4xbf16>
    tpu.vector_store %arg9[%c0_26, %c0_27, %c16], %25 {strides = array<i32>} : memref<4x8x64xbf16, #tpu.memory_space<vmem>>, vector<4x8x4xbf16>,
    %c0_i32_28 = arith.constant 0 : i32
    %27 = arith.addi %1, %c0_i32_28 : i32
    %c0_29 = arith.constant 0 : index
    %28 = arith.index_cast %27 : i32 to index
    %c0_30 = arith.constant 0 : index
    %c0_31 = arith.constant 0 : index
    %29 = vector.load %arg5[%c0_29, %28, %c0_30, %c0_31] : memref<1x9x9x4xbf16, #tpu.memory_space<vmem>>, vector<1x4x8x4xbf16>
    %30 = vector.shape_cast %29 : vector<1x4x8x4xbf16> to vector<4x8x4xbf16>
    %c0_32 = arith.constant 0 : index
    %c0_33 = arith.constant 0 : index
    %c20 = arith.constant 20 : index
    %31 = vector.load %arg9[%c0_32, %c0_33, %c20] : memref<4x8x64xbf16, #tpu.memory_space<vmem>>, vector<4x8x4xbf16>
    tpu.vector_store %arg9[%c0_32, %c0_33, %c20], %30 {strides = array<i32>} : memref<4x8x64xbf16, #tpu.memory_space<vmem>>, vector<4x8x4xbf16>,
    %c0_i32_34 = arith.constant 0 : i32
    %32 = arith.addi %1, %c0_i32_34 : i32
    %c0_35 = arith.constant 0 : index
    %33 = arith.index_cast %32 : i32 to index
    %c1_36 = arith.constant 1 : index
    %c0_37 = arith.constant 0 : index
    %34 = vector.load %arg4[%c0_35, %33, %c1_36, %c0_37] : memref<1x9x9x4xbf16, #tpu.memory_space<vmem>>, vector<1x4x8x4xbf16>
    %35 = vector.shape_cast %34 : vector<1x4x8x4xbf16> to vector<4x8x4xbf16>
    %c0_38 = arith.constant 0 : index
    %c0_39 = arith.constant 0 : index
    %c24 = arith.constant 24 : index
    %36 = vector.load %arg9[%c0_38, %c0_39, %c24] : memref<4x8x64xbf16, #tpu.memory_space<vmem>>, vector<4x8x4xbf16>
    tpu.vector_store %arg9[%c0_38, %c0_39, %c24], %35 {strides = array<i32>} : memref<4x8x64xbf16, #tpu.memory_space<vmem>>, vector<4x8x4xbf16>,
    %c0_i32_40 = arith.constant 0 : i32
    %37 = arith.addi %1, %c0_i32_40 : i32
    %c0_41 = arith.constant 0 : index
    %38 = arith.index_cast %37 : i32 to index
    %c1_42 = arith.constant 1 : index
    %c0_43 = arith.constant 0 : index
    %39 = vector.load %arg5[%c0_41, %38, %c1_42, %c0_43] : memref<1x9x9x4xbf16, #tpu.memory_space<vmem>>, vector<1x4x8x4xbf16>
    %40 = vector.shape_cast %39 : vector<1x4x8x4xbf16> to vector<4x8x4xbf16>
    %c0_44 = arith.constant 0 : index
    %c0_45 = arith.constant 0 : index
    %c28 = arith.constant 28 : index
    %41 = vector.load %arg9[%c0_44, %c0_45, %c28] : memref<4x8x64xbf16, #tpu.memory_space<vmem>>, vector<4x8x4xbf16>
    tpu.vector_store %arg9[%c0_44, %c0_45, %c28], %40 {strides = array<i32>} : memref<4x8x64xbf16, #tpu.memory_space<vmem>>, vector<4x8x4xbf16>,
    %c1_i32 = arith.constant 1 : i32
    %42 = arith.addi %1, %c1_i32 : i32
    %c0_46 = arith.constant 0 : index
    %43 = arith.index_cast %42 : i32 to index
    %c0_47 = arith.constant 0 : index
    %c0_48 = arith.constant 0 : index
    %44 = vector.load %arg2[%c0_46, %43, %c0_47, %c0_48] : memref<1x9x9x4xbf16, #tpu.memory_space<vmem>>, vector<1x4x8x4xbf16>
    %45 = vector.shape_cast %44 : vector<1x4x8x4xbf16> to vector<4x8x4xbf16>
    %c0_49 = arith.constant 0 : index
    %c0_50 = arith.constant 0 : index
    %c32 = arith.constant 32 : index
    %46 = vector.load %arg9[%c0_49, %c0_50, %c32] : memref<4x8x64xbf16, #tpu.memory_space<vmem>>, vector<4x8x4xbf16>
    tpu.vector_store %arg9[%c0_49, %c0_50, %c32], %45 {strides = array<i32>} : memref<4x8x64xbf16, #tpu.memory_space<vmem>>, vector<4x8x4xbf16>,
    %c1_i32_51 = arith.constant 1 : i32
    %47 = arith.addi %1, %c1_i32_51 : i32
    %c0_52 = arith.constant 0 : index
    %48 = arith.index_cast %47 : i32 to index
    %c0_53 = arith.constant 0 : index
    %c0_54 = arith.constant 0 : index
    %49 = vector.load %arg3[%c0_52, %48, %c0_53, %c0_54] : memref<1x9x9x4xbf16, #tpu.memory_space<vmem>>, vector<1x4x8x4xbf16>
    %50 = vector.shape_cast %49 : vector<1x4x8x4xbf16> to vector<4x8x4xbf16>
    %c0_55 = arith.constant 0 : index
    %c0_56 = arith.constant 0 : index
    %c36 = arith.constant 36 : index
    %51 = vector.load %arg9[%c0_55, %c0_56, %c36] : memref<4x8x64xbf16, #tpu.memory_space<vmem>>, vector<4x8x4xbf16>
    tpu.vector_store %arg9[%c0_55, %c0_56, %c36], %50 {strides = array<i32>} : memref<4x8x64xbf16, #tpu.memory_space<vmem>>, vector<4x8x4xbf16>,
    %c1_i32_57 = arith.constant 1 : i32
    %52 = arith.addi %1, %c1_i32_57 : i32
    %c0_58 = arith.constant 0 : index
    %53 = arith.index_cast %52 : i32 to index
    %c1_59 = arith.constant 1 : index
    %c0_60 = arith.constant 0 : index
    %54 = vector.load %arg2[%c0_58, %53, %c1_59, %c0_60] : memref<1x9x9x4xbf16, #tpu.memory_space<vmem>>, vector<1x4x8x4xbf16>
    %55 = vector.shape_cast %54 : vector<1x4x8x4xbf16> to vector<4x8x4xbf16>
    %c0_61 = arith.constant 0 : index
    %c0_62 = arith.constant 0 : index
    %c40 = arith.constant 40 : index
    %56 = vector.load %arg9[%c0_61, %c0_62, %c40] : memref<4x8x64xbf16, #tpu.memory_space<vmem>>, vector<4x8x4xbf16>
    tpu.vector_store %arg9[%c0_61, %c0_62, %c40], %55 {strides = array<i32>} : memref<4x8x64xbf16, #tpu.memory_space<vmem>>, vector<4x8x4xbf16>,
    %c1_i32_63 = arith.constant 1 : i32
    %57 = arith.addi %1, %c1_i32_63 : i32
    %c0_64 = arith.constant 0 : index
    %58 = arith.index_cast %57 : i32 to index
    %c1_65 = arith.constant 1 : index
    %c0_66 = arith.constant 0 : index
    %59 = vector.load %arg3[%c0_64, %58, %c1_65, %c0_66] : memref<1x9x9x4xbf16, #tpu.memory_space<vmem>>, vector<1x4x8x4xbf16>
    %60 = vector.shape_cast %59 : vector<1x4x8x4xbf16> to vector<4x8x4xbf16>
    %c0_67 = arith.constant 0 : index
    %c0_68 = arith.constant 0 : index
    %c44 = arith.constant 44 : index
    %61 = vector.load %arg9[%c0_67, %c0_68, %c44] : memref<4x8x64xbf16, #tpu.memory_space<vmem>>, vector<4x8x4xbf16>
    tpu.vector_store %arg9[%c0_67, %c0_68, %c44], %60 {strides = array<i32>} : memref<4x8x64xbf16, #tpu.memory_space<vmem>>, vector<4x8x4xbf16>,
    %c1_i32_69 = arith.constant 1 : i32
    %62 = arith.addi %1, %c1_i32_69 : i32
    %c0_70 = arith.constant 0 : index
    %63 = arith.index_cast %62 : i32 to index
    %c0_71 = arith.constant 0 : index
    %c0_72 = arith.constant 0 : index
    %64 = vector.load %arg4[%c0_70, %63, %c0_71, %c0_72] : memref<1x9x9x4xbf16, #tpu.memory_space<vmem>>, vector<1x4x8x4xbf16>
    %65 = vector.shape_cast %64 : vector<1x4x8x4xbf16> to vector<4x8x4xbf16>
    %c0_73 = arith.constant 0 : index
    %c0_74 = arith.constant 0 : index
    %c48 = arith.constant 48 : index
    %66 = vector.load %arg9[%c0_73, %c0_74, %c48] : memref<4x8x64xbf16, #tpu.memory_space<vmem>>, vector<4x8x4xbf16>
    tpu.vector_store %arg9[%c0_73, %c0_74, %c48], %65 {strides = array<i32>} : memref<4x8x64xbf16, #tpu.memory_space<vmem>>, vector<4x8x4xbf16>,
    %c1_i32_75 = arith.constant 1 : i32
    %67 = arith.addi %1, %c1_i32_75 : i32
    %c0_76 = arith.constant 0 : index
    %68 = arith.index_cast %67 : i32 to index
    %c0_77 = arith.constant 0 : index
    %c0_78 = arith.constant 0 : index
    %69 = vector.load %arg5[%c0_76, %68, %c0_77, %c0_78] : memref<1x9x9x4xbf16, #tpu.memory_space<vmem>>, vector<1x4x8x4xbf16>
    %70 = vector.shape_cast %69 : vector<1x4x8x4xbf16> to vector<4x8x4xbf16>
    %c0_79 = arith.constant 0 : index
    %c0_80 = arith.constant 0 : index
    %c52 = arith.constant 52 : index
    %71 = vector.load %arg9[%c0_79, %c0_80, %c52] : memref<4x8x64xbf16, #tpu.memory_space<vmem>>, vector<4x8x4xbf16>
    tpu.vector_store %arg9[%c0_79, %c0_80, %c52], %70 {strides = array<i32>} : memref<4x8x64xbf16, #tpu.memory_space<vmem>>, vector<4x8x4xbf16>,
    %c1_i32_81 = arith.constant 1 : i32
    %72 = arith.addi %1, %c1_i32_81 : i32
    %c0_82 = arith.constant 0 : index
    %73 = arith.index_cast %72 : i32 to index
    %c1_83 = arith.constant 1 : index
    %c0_84 = arith.constant 0 : index
    %74 = vector.load %arg4[%c0_82, %73, %c1_83, %c0_84] : memref<1x9x9x4xbf16, #tpu.memory_space<vmem>>, vector<1x4x8x4xbf16>
    %75 = vector.shape_cast %74 : vector<1x4x8x4xbf16> to vector<4x8x4xbf16>
    %c0_85 = arith.constant 0 : index
    %c0_86 = arith.constant 0 : index
    %c56 = arith.constant 56 : index
    %76 = vector.load %arg9[%c0_85, %c0_86, %c56] : memref<4x8x64xbf16, #tpu.memory_space<vmem>>, vector<4x8x4xbf16>
    tpu.vector_store %arg9[%c0_85, %c0_86, %c56], %75 {strides = array<i32>} : memref<4x8x64xbf16, #tpu.memory_space<vmem>>, vector<4x8x4xbf16>,
    %c1_i32_87 = arith.constant 1 : i32
    %77 = arith.addi %1, %c1_i32_87 : i32
    %c0_88 = arith.constant 0 : index
    %78 = arith.index_cast %77 : i32 to index
    %c1_89 = arith.constant 1 : index
    %c0_90 = arith.constant 0 : index
    %79 = vector.load %arg5[%c0_88, %78, %c1_89, %c0_90] : memref<1x9x9x4xbf16, #tpu.memory_space<vmem>>, vector<1x4x8x4xbf16>
    %80 = vector.shape_cast %79 : vector<1x4x8x4xbf16> to vector<4x8x4xbf16>
    %c0_91 = arith.constant 0 : index
    %c0_92 = arith.constant 0 : index
    %c60 = arith.constant 60 : index
    %81 = vector.load %arg9[%c0_91, %c0_92, %c60] : memref<4x8x64xbf16, #tpu.memory_space<vmem>>, vector<4x8x4xbf16>
    tpu.vector_store %arg9[%c0_91, %c0_92, %c60], %80 {strides = array<i32>} : memref<4x8x64xbf16, #tpu.memory_space<vmem>>, vector<4x8x4xbf16>,
    %c0_93 = arith.constant 0 : index
    %c0_94 = arith.constant 0 : index
    %c0_95 = arith.constant 0 : index
    %82 = vector.load %arg9[%c0_93, %c0_94, %c0_95] : memref<4x8x64xbf16, #tpu.memory_space<vmem>>, vector<4x8x64xbf16>
    %83 = vector.shape_cast %82 : vector<4x8x64xbf16> to vector<32x64xbf16>
    %c0_96 = arith.constant 0 : index
    %c0_97 = arith.constant 0 : index
    %84 = vector.load %arg6[%c0_96, %c0_97] : memref<64x128xbf16, #tpu.memory_space<vmem>>, vector<64x128xbf16>
    %cst = arith.constant dense<0.000000e+00> : vector<32x128xf32>
    %85 = tpu.matmul %83, %84, %cst {dimension_numbers = #tpu.dot_dimension_numbers<[1], [0], [0], [1], [0, 0, 1, 1], [], []>} : vector<32x64xbf16>, vector<64x128xbf16>, vector<32x128xf32> -> vector<32x128xf32>
    %c0_98 = arith.constant 0 : index
    %c0_99 = arith.constant 0 : index
    %86 = vector.load %arg7[%c0_98, %c0_99] : memref<1x128xf32, #tpu.memory_space<vmem>>, vector<1x128xf32>
    %87 = vector.broadcast %86 : vector<1x128xf32> to vector<32x128xf32>
    %88 = arith.addf %85, %87 : vector<32x128xf32>
    %c0_100 = arith.constant 0 : index
    %c0_101 = arith.constant 0 : index
    %c0_102 = arith.constant 0 : index
    %89 = vector.load %arg8[%c0_100, %c0_101, %c0_102] : memref<1x32x128xf32, #tpu.memory_space<vmem>>, vector<1x32x128xf32>
    %90 = vector.shape_cast %89 : vector<1x32x128xf32> to vector<32x128xf32>
    %91 = vector.shape_cast %88 : vector<32x128xf32> to vector<1x32x128xf32>
    tpu.vector_store %arg8[%c0_100, %c0_101, %c0_102], %91 {strides = array<i32>} : memref<1x32x128xf32, #tpu.memory_space<vmem>>, vector<1x32x128xf32>,
    return
  }
  func.func @transform_0(%arg0: i32, %arg1: i32) -> (i32, i32, i32, i32) {
    %c0_i32 = arith.constant 0 : i32
    %c0_i32_0 = arith.constant 0 : i32
    %c0_i32_1 = arith.constant 0 : i32
    %c0_i32_2 = arith.constant 0 : i32
    return %arg0, %c0_i32, %c0_i32_0, %c0_i32_1 : i32, i32, i32, i32
  }
  func.func @transform_1(%arg0: i32, %arg1: i32) -> (i32, i32, i32, i32) {
    %c0_i32 = arith.constant 0 : i32
    %c0_i32_0 = arith.constant 0 : i32
    %c0_i32_1 = arith.constant 0 : i32
    %c0_i32_2 = arith.constant 0 : i32
    return %arg0, %c0_i32, %c0_i32_0, %c0_i32_1 : i32, i32, i32, i32
  }
  func.func @transform_2(%arg0: i32, %arg1: i32) -> (i32, i32, i32, i32) {
    %c0_i32 = arith.constant 0 : i32
    %c0_i32_0 = arith.constant 0 : i32
    %c0_i32_1 = arith.constant 0 : i32
    %c0_i32_2 = arith.constant 0 : i32
    return %arg0, %c0_i32, %c0_i32_0, %c0_i32_1 : i32, i32, i32, i32
  }
  func.func @transform_3(%arg0: i32, %arg1: i32) -> (i32, i32, i32, i32) {
    %c0_i32 = arith.constant 0 : i32
    %c0_i32_0 = arith.constant 0 : i32
    %c0_i32_1 = arith.constant 0 : i32
    %c0_i32_2 = arith.constant 0 : i32
    return %arg0, %c0_i32, %c0_i32_0, %c0_i32_1 : i32, i32, i32, i32
  }
  func.func @transform_4(%arg0: i32, %arg1: i32) -> (i32, i32) {
    %c0_i32 = arith.constant 0 : i32
    %c0_i32_0 = arith.constant 0 : i32
    %c0_i32_1 = arith.constant 0 : i32
    return %c0_i32, %c0_i32_0 : i32, i32
  }
  func.func @transform_5(%arg0: i32, %arg1: i32) -> (i32, i32) {
    %c0_i32 = arith.constant 0 : i32
    %c0_i32_0 = arith.constant 0 : i32
    %c0_i32_1 = arith.constant 0 : i32
    return %c0_i32, %c0_i32_0 : i32, i32
  }
  func.func @transform_6(%arg0: i32, %arg1: i32) -> (i32, i32, i32) {
    %c0_i32 = arith.constant 0 : i32
    %c0_i32_0 = arith.constant 0 : i32
    return %arg0, %arg1, %c0_i32 : i32, i32, i32
  }
}

</mosaic_0001>

<bundles_post_ra>
// kernel: _cvi_apply.1
= control target key start
LH: loop header
LB: loop body
LE: loop exit
PB: predicated region body
PF: predicated region fallthrough
CT: control target
= control target key end

     0   :  { %s1712_s21 = smov 0   ;;  %s1714_s22 = smov 0   ;;  %s2001_s0 = inlined_call_operand.vmem [shape: bf16[2,9,9,4], index: 0, kind: input, shape index: {}]   ;;  %s2002_s1 = inlined_call_operand.vmem [shape: bf16[2,9,9,4], index: 1, kind: input, shape index: {}]   ;;  %s2003_s2 = inlined_call_operand.vmem [shape: bf16[2,9,9,4], index: 2, kind: input, shape index: {}]   ;;  %s2004_s3 = inlined_call_operand.vmem [shape: bf16[2,9,9,4], index: 3, kind: input, shape index: {}]   ;;  %s2005_s4 = inlined_call_operand.vmem [shape: bf16[64,128], index: 4, kind: input, shape index: {}]   ;;  %s2006_s5 = inlined_call_operand.vmem [shape: f32[1,128], index: 5, kind: input, shape index: {}]   ;;  %s2007_s6 = inlined_call_operand.vmem [shape: f32[2,64,128], index: 6, kind: output, shape index: {}]  }
   0x1   :  { %s1716_s23 = smov 0   ;;  %s1718_s24 = smov 0  }
   0x2   :  { %s1720_s25 = smov 0  }
   0x3 LB: > { %s25_s26 = sadd.s32 1, %s1652_s23  ;;  %s28_s27 = sadd.s32 1, %s1656_s24  ;;  %s1660_s25 = sphi %s1720_s25, %s16_s25   ;;  %s1656_s24 = sphi %s1718_s24, %s2013_s24   ;;  %s1652_s23 = sphi %s1716_s23, %s2012_s23   ;;  %s1648_s22 = sphi %s1714_s22, %s2011_s22   ;;  %s1644_s21 = sphi %s1712_s21, %s2010_s21  }
   0x4   : > { %p26_p0 = scmp.ge.s32.totalorder %s25_s26, 2  ;;  %p1452_p1 = scmp.ge.s32.totalorder %s1660_s25, 1 }
   0x5   : > { %p256_p2 = scmp.lt.s32.totalorder %s1660_s25, 5 }
   0x6   : > { %s2015_s26 = smov (%p26_p0, %s25_s26), 0  ;;  %s2017_s27 = smov (!%p26_p0, %s28_s27), %s1656_s24 }
   0x7   : > { %p257_p3 = pnand %p1452_p1, %p256_p2  ;;  %p30_p4 = scmp.ge.s32.totalorder %s2017_s27, 2 }
   0x8   : > { %p305_p5 = scmp.lt.s32.totalorder (!%p257_p3), %s1648_s22, 1  ;;  %s1750_s29 = sshll.u32 (!%p257_p3), %s1644_s21, 5  ;;  %vm384_vm0 = vsmask.f32 (!%p257_p3), 3328  ;;  %vm385_vm1 = vsmask.f32 (!%p257_p3), 7440 }
   0x9   : > { %s2019_s27 = smov (%p30_p4, %s2017_s27), 0  ;;  %260 = sbr.rel (%p257_p3) target bundleno = 484 (0x1e4), region = 44 }
   0xa   : > { %s1662_s14 = smov (!%p257_p3), 4   ;;  %vm1779_vm2 = vmor (!%p257_p3), %vm384_vm0, %vm385_vm1  ;;  %s1663_s15 = smov (!%p257_p3), 8   ;;  %vm344_vm3 = vcmask (!%p257_p3), 27648   ;;  %vm371_vm4 = vcmask (!%p257_p3), 60448   ;;  %vm455_vm5 = vcmask (!%p257_p3), 93248   ;;  %vm536_vm6 = vcmask (!%p257_p3), 126048  }
   0xb   : > { %s1664_s19 = smov (!%p257_p3), 12   ;;  %s1665_s9 = smov (!%p257_p3), 16   ;;  %vm563_vm7 = vcmask (!%p257_p3), 158848   ;;  %vm590_vm8 = vcmask (!%p257_p3), 191648   ;;  %vm671_vm9 = vcmask (!%p257_p3), 224448   ;;  %vm752_vm10 = vcmask (!%p257_p3), 257248  }
   0xc   : > { %s1671_s16 = smov (!%p257_p3), 40   ;;  %s1674_s17 = smov (!%p257_p3), 52   ;;  %vm781_vm11 = vcmask (!%p257_p3), 290048   ;;  %vm808_vm12 = vcmask (!%p257_p3), 322848   ;;  %vm889_vm13 = vcmask (!%p257_p3), 355648   ;;  %vm970_vm14 = vcmask (!%p257_p3), 388448  }
   0xd   : > { %s1675_s7 = smov (!%p257_p3), 56   ;;  %vm997_vm15 = vcmask (!%p257_p3), 421248   ;;  %vm1024_vm0 = vcmask (!%p257_p3), 454048   ;;  %vm1105_vm1 = vcmask (!%p257_p3), 486848  }
  0x10   : > { %s2021_s22 = smov (!%p305_p5, %s1648_s22), 1 }
  0x11   : > { %s1747_s28 = smul.u32 72, %s2021_s22 }
  0x13   : > { %s314_s8 = scalar_lea.vmem %s2002_s1, %s1747_s28  ;;  %s309_s11 = scalar_lea.vmem %s2001_s0, %s1747_s28 }
  0x14   : > { %s1761_s12 = scalar_lea.vmem %s314_s8, %s1750_s29  ;;  %s1764_s13 = scalar_lea.vmem %s309_s11, %s1750_s29 }
  0x15   : > { %v353_v0 = vld [vmem:[%s1761_s12 + $0x10] sm:$0xf]  ;;  %v351_v1 = vld [vmem:[%s1761_s12] sm:$0xf]  ;;  %v354_v2 = vld [vmem:[%s1761_s12 + $0x18] sm:$0xf]  ;;  %s319_s18 = scalar_lea.vmem %s2003_s2, %s1747_s28  ;;  %s324_s8 = scalar_lea.vmem %s2004_s3, %s1747_s28 }
  0x16   : > { %363 = vrot.lane.b32.xlu1 %v353_v0, %s1662_s14  ;;  %359 = vrot.lane.b32.xlu0 %v351_v1, %s1662_s14  ;;  %v352_v3 = vld [vmem:[%s1761_s12 + $0x8] sm:$0xf]  ;;  %v379_v5 = vld [vmem:[%s1764_s13 + $0xc] sm:$0x1]  ;;  %s1809_s20 = scalar_lea.vmem %s319_s18, %s1750_s29  ;;  %s1826_s10 = scalar_lea.vmem %s324_s8, %s1750_s29 }
  0x17   : > { %v378_v4 = vld [vmem:[%s1764_s13 + $0x8] sm:$0xf]  ;;  %v376_v8 = vld [vmem:[%s1764_s13] sm:$0xf]  ;;  %v411_v9 = vshll.u32 %v379_v5, 16  ;;  %s1666_s28 = smov 20  }
  0x18   : > { %v402_v6 = vshrl.u32 %v378_v4, 16  ;;  %v405_v7 = vshll.u32 %v378_v4, 16  ;;  %v377_v10 = vld [vmem:[%s1764_s13 + $0x4] sm:$0x1]  ;;  %v388_v11 = vshrl.u32 %v376_v8, 16  ;;  %v391_v12 = vshll.u32 %v376_v8, 16 }
  0x19   : > { %v397_v15 = vshll.u32 %v377_v10, 16  ;;  %v382_v16 = vld [vmem:[%s1764_s13 + $0x18] sm:$0xf]  ;;  %v413_v17 = vrot.slane %v411_v9, 5  ;;  %v383_v20 = vld [vmem:[%s1764_s13 + $0x1c] sm:$0x1] }
  0x1a   : > { %v404_v13 = vrot.slane %v402_v6, 4  ;;  %v407_v14 = vrot.slane %v405_v7, 5  ;;  %365 = vrot.lane.b32.xlu1 %v354_v2, %s1662_s14  ;;  %361 = vrot.lane.b32.xlu0 %v352_v3, %s1662_s14  ;;  %v390_v18 = vrot.slane %v388_v11, 4  ;;  %v393_v19 = vrot.slane %v391_v12, 5  ;;  %v380_v26 = vld [vmem:[%s1764_s13 + $0x10] sm:$0xf] }
  0x1b   : > { %v430_v21 = vshrl.u32 %v382_v16, 16  ;;  %v399_v23 = vrot.slane %v397_v15, 5  ;;  %v433_v24 = vshll.u32 %v382_v16, 16  ;;  %v439_v25 = vshll.u32 %v383_v20, 16  ;;  %v381_v30 = vld [vmem:[%s1764_s13 + $0x14] sm:$0x1] }
  0x1c   : > { %v408_v22 = vor.u32 %v407_v14, %v404_v13  ;;  %v394_v28 = vor.u32 %v393_v19, %v390_v18  ;;  %v416_v31 = vshrl.u32 %v380_v26, 16  ;;  %v419_v32 = vshll.u32 %v380_v26, 16  ;;  %v462_v37 = vld [vmem:[%s1761_s12 + $0x8] sm:$0xf]  ;;  %v463_v41 = vld [vmem:[%s1761_s12 + $0xc] sm:$0x1] }
  0x1d   : > { %v432_v29 = vrot.slane %v430_v21, 4  ;;  %v435_v34 = vrot.slane %v433_v24, 5  ;;  %v441_v35 = vrot.slane %v439_v25, 5  ;;  %v425_v36 = vshll.u32 %v381_v30, 16  ;;  %v460_v47 = vld [vmem:[%s1761_s12] sm:$0xf] }
  0x1e   : > { %v409_v33 = vrot.slane %v408_v22, 4  ;;  %v395_v38 = vrot.slane %v394_v28, 4  ;;  %v418_v39 = vrot.slane %v416_v31, 4  ;;  %v421_v40 = vrot.slane %v419_v32, 5  ;;  %v461_v48 = vld [vmem:[%s1761_s12 + $0x4] sm:$0x1] }
  0x1f   : > { %v483_v42 = vshrl.u32 %v462_v37, 16  ;;  %v436_v44 = vor.u32 %v435_v34, %v432_v29  ;;  %v427_v45 = vrot.slane %v425_v36, 5  ;;  %v486_v46 = vshll.u32 %v462_v37, 16  ;;  %v466_v53 = vld [vmem:[%s1761_s12 + $0x18] sm:$0xf]  ;;  %s1667_s29 = smov 24  }
  0x20   : > { %v414_v43 = vsel %vm1779_vm2, %v409_v33, %v413_v17  ;;  %v400_v49 = vsel %vm1779_vm2, %v395_v38, %v399_v23  ;;  %v422_v50 = vor.u32 %v421_v40, %v418_v39  ;;  %v492_v52 = vshll.u32 %v463_v41, 16  ;;  %v467_v58 = vld [vmem:[%s1761_s12 + $0x1c] sm:$0x1]  ;;  %v464_v63 = vld [vmem:[%s1761_s12 + $0x10] sm:$0xf]  ;;  %s1668_s11 = smov 28  }
  0x21   : > { %445 = vrot.lane.b32.xlu1 %v414_v43, %s1663_s15  ;;  %v485_v51 = vrot.slane %v483_v42, 4  ;;  %443 = vrot.lane.b32.xlu0 %v400_v49, %s1663_s15  ;;  %v437_v54 = vrot.slane %v436_v44, 4  ;;  %v488_v55 = vrot.slane %v486_v46, 5  ;;  %v469_v56 = vshrl.u32 %v460_v47, 16  ;;  %v465_v4 = vld [vmem:[%s1761_s12 + $0x14] sm:$0x1] }
  0x22   : > { %v472_v57 = vshll.u32 %v460_v47, 16  ;;  %v423_v59 = vrot.slane %v422_v50, 4  ;;  %v494_v60 = vrot.slane %v492_v52, 5  ;;  %v478_v61 = vshll.u32 %v461_v48, 16  ;;  %v597_v26 = vld [vmem:[%s1809_s20 + $0x8] sm:$0xf] }
  0x23   : > { %v511_v62 = vshrl.u32 %v466_v53, 16  ;;  %v442_v0 = vsel %vm1779_vm2, %v437_v54, %v441_v35  ;;  %v489_v1 = vor.u32 %v488_v55, %v485_v51  ;;  %v471_v2 = vrot.slane %v469_v56, 4  ;;  %v595_v30 = vld [vmem:[%s1809_s20] sm:$0xf]  ;;  %v544_v34 = vld [vmem:[%s1809_s20 + $0x8] sm:$0xf] }
  0x24   : > { %v474_v3 = vrot.slane %v472_v57, 5  ;;  %v428_v5 = vsel %vm1779_vm2, %v423_v59, %v427_v45  ;;  %v480_v6 = vrot.slane %v478_v61, 5  ;;  %v514_v8 = vshll.u32 %v466_v53, 16  ;;  %v601_v35 = vld [vmem:[%s1809_s20 + $0x18] sm:$0xf]  ;;  %s1669_s14 = smov 32  }
  0x25   : > { %449 = vrot.lane.b32.xlu1 %v442_v0, %s1663_s15  ;;  %v513_v7 = vrot.slane %v511_v62, 4  ;;  %447 = vrot.lane.b32.xlu0 %v428_v5, %s1663_s15  ;;  %v490_v9 = vrot.slane %v489_v1, 4  ;;  %v520_v11 = vshll.u32 %v467_v58, 16  ;;  %v497_v12 = vshrl.u32 %v464_v63, 16  ;;  %v543_v38 = vld [vmem:[%s1809_s20] sm:$0xf] }
  0x26   : > { %v475_v10 = vor.u32 %v474_v3, %v471_v2  ;;  %v516_v13 = vrot.slane %v514_v8, 5  ;;  %v500_v14 = vshll.u32 %v464_v63, 16  ;;  %v506_v15 = vshll.u32 %v465_v4, 16  ;;  %v599_v39 = vld [vmem:[%s1809_s20 + $0x10] sm:$0xf]  ;;  %s1670_s15 = smov 36  }
  0x27   : > { %v495_v16 = vsel %vm1779_vm2, %v490_v9, %v494_v60  ;;  %v499_v18 = vrot.slane %v497_v12, 4  ;;  %v522_v20 = vrot.slane %v520_v11, 5  ;;  %v618_v31 = vshrl.u32 %v597_v26, 16  ;;  %v546_v44 = vld [vmem:[%s1809_s20 + $0x18] sm:$0xf] }
  0x28   : > { %v476_v17 = vrot.slane %v475_v10, 4  ;;  %v517_v19 = vor.u32 %v516_v13, %v513_v7  ;;  %v502_v21 = vrot.slane %v500_v14, 5  ;;  %v508_v25 = vrot.slane %v506_v15, 5  ;;  %v598_v45 = vld [vmem:[%s1809_s20 + $0xc] sm:$0x1] }
  0x29   : > { %526 = vrot.lane.b32.xlu1 %v495_v16, %s1664_s19  ;;  %v621_v32 = vshll.u32 %v597_v26, 16  ;;  %v604_v36 = vshrl.u32 %v595_v30, 16  ;;  %v607_v37 = vshll.u32 %v595_v30, 16  ;;  %v620_v40 = vrot.slane %v618_v31, 4  ;;  %v678_v50 = vld [vmem:[%s1826_s10 + $0x8] sm:$0xf] }
  0x2a   : > { %v481_v22 = vsel %vm1779_vm2, %v476_v17, %v480_v6  ;;  %v518_v23 = vrot.slane %v517_v19, 4  ;;  %v503_v24 = vor.u32 %v502_v21, %v499_v18  ;;  %v646_v42 = vshrl.u32 %v601_v35, 16  ;;  %v545_v51 = vld [vmem:[%s1809_s20 + $0x10] sm:$0xf]  ;;  %v571_v52 = vld [vmem:[%s1826_s10 + $0x8] sm:$0xf] }
  0x2b   : > { %524 = vrot.lane.b32.xlu0 %v481_v22, %s1664_s19  ;;  %v623_v41 = vrot.slane %v621_v32, 5  ;;  %v649_v43 = vshll.u32 %v601_v35, 16  ;;  %v606_v46 = vrot.slane %v604_v36, 4  ;;  %v609_v47 = vrot.slane %v607_v37, 5  ;;  %v596_v53 = vld [vmem:[%s1809_s20 + $0x4] sm:$0x1] }
  0x2c   : > { %v523_v28 = vsel %vm1779_vm2, %v518_v23, %v522_v20  ;;  %v504_v29 = vrot.slane %v503_v24, 4  ;;  %v632_v48 = vshrl.u32 %v599_v39, 16  ;;  %v635_v49 = vshll.u32 %v599_v39, 16  ;;  %v676_v58 = vld [vmem:[%s1826_s10] sm:$0xf] }
  0x2d   : > { %530 = vrot.lane.b32.xlu1 %v523_v28, %s1664_s19  ;;  %v624_v54 = vor.u32 %v623_v41, %v620_v40  ;;  %v627_v55 = vshll.u32 %v598_v45, 16  ;;  %v648_v56 = vrot.slane %v646_v42, 4  ;;  %v651_v57 = vrot.slane %v649_v43, 5  ;;  %v570_v59 = vld [vmem:[%s1826_s10] sm:$0xf] }
  0x2e   : > { %v509_v33 = vsel %vm1779_vm2, %v504_v29, %v508_v25  ;;  %v602_v60 = vld [vmem:[%s1809_s20 + $0x1c] sm:$0x1]  ;;  %v699_v61 = vshrl.u32 %v678_v50, 16  ;;  %v702_v62 = vshll.u32 %v678_v50, 16  ;;  %v610_v63 = vor.u32 %v609_v47, %v606_v46  ;;  %v682_v3 = vld [vmem:[%s1826_s10 + $0x18] sm:$0xf] }
  0x2f   : > { %528 = vrot.lane.b32.xlu0 %v509_v33, %s1664_s19  ;;  %v613_v0 = vshll.u32 %v596_v53, 16  ;;  %v634_v1 = vrot.slane %v632_v48, 4  ;;  %v637_v2 = vrot.slane %v635_v49, 5  ;;  %v573_v4 = vld [vmem:[%s1826_s10 + $0x18] sm:$0xf]  ;;  %v685_v6 = vshrl.u32 %v676_v58, 16 }
  0x30   : > { %v600_v5 = vld [vmem:[%s1809_s20 + $0x14] sm:$0x1]  ;;  %v688_v7 = vshll.u32 %v676_v58, 16  ;;  %v625_v8 = vrot.slane %v624_v54, 4  ;;  %v629_v9 = vrot.slane %v627_v55, 5  ;;  %v652_v10 = vor.u32 %v651_v57, %v648_v56 }
  0x31   : > { %553 = vrot.lane.b32.xlu1 %v544_v34, %s1665_s9  ;;  %v655_v11 = vshll.u32 %v602_v60, 16  ;;  %v680_v12 = vld [vmem:[%s1826_s10 + $0x10] sm:$0xf]  ;;  %v679_v13 = vld [vmem:[%s1826_s10 + $0xc] sm:$0x1]  ;;  %v701_v14 = vrot.slane %v699_v61, 4  ;;  %v638_v20 = vor.u32 %v637_v2, %v634_v1 }
  0x32   : > { %v704_v15 = vrot.slane %v702_v62, 5  ;;  %v727_v16 = vshrl.u32 %v682_v3, 16  ;;  %v730_v17 = vshll.u32 %v682_v3, 16  ;;  %v611_v18 = vrot.slane %v610_v63, 4  ;;  %v572_v22 = vld [vmem:[%s1826_s10 + $0x10] sm:$0xf] }
  0x33   : > { %551 = vrot.lane.b32.xlu0 %v543_v38, %s1665_s9  ;;  %v615_v19 = vrot.slane %v613_v0, 5  ;;  %v641_v21 = vshll.u32 %v600_v5, 16  ;;  %v687_v23 = vrot.slane %v685_v6, 4  ;;  %v690_v24 = vrot.slane %v688_v7, 5  ;;  %v677_v31 = vld [vmem:[%s1826_s10 + $0x4] sm:$0x1] }
  0x34   : > { %v713_v25 = vshrl.u32 %v680_v12, 16  ;;  %v716_v26 = vshll.u32 %v680_v12, 16  ;;  %v630_v28 = vsel %vm1779_vm2, %v625_v8, %v629_v9  ;;  %v657_v29 = vrot.slane %v655_v11, 5  ;;  %v683_v39 = vld [vmem:[%s1826_s10 + $0x1c] sm:$0x1] }
  0x35   : > { %557 = vrot.lane.b32.xlu1 %v546_v44, %s1665_s9  ;;  %v708_v30 = vshll.u32 %v679_v13, 16  ;;  %v653_v32 = vrot.slane %v652_v10, 4  ;;  %v705_v33 = vor.u32 %v704_v15, %v701_v14  ;;  %v729_v34 = vrot.slane %v727_v16, 4  ;;  %v681_v45 = vld [vmem:[%s1826_s10 + $0x14] sm:$0x1] }
  0x36   : > { %v732_v35 = vrot.slane %v730_v17, 5  ;;  %v616_v36 = vsel %vm1779_vm2, %v611_v18, %v615_v19  ;;  %v639_v37 = vrot.slane %v638_v20, 4  ;;  %v643_v38 = vrot.slane %v641_v21, 5  ;;  %v1480_v62 = vld [vmem:[%s1764_s13 + $0x10] sm:$0xf] }
  0x37   : > { %555 = vrot.lane.b32.xlu0 %v545_v51, %s1665_s9  ;;  %v691_v40 = vor.u32 %v690_v24, %v687_v23  ;;  %v694_v41 = vshll.u32 %v677_v31, 16  ;;  %v715_v42 = vrot.slane %v713_v25, 4  ;;  %v718_v43 = vrot.slane %v716_v26, 5  ;;  %v1478_v0 = vld [vmem:[%s1764_s13 + $0x8] sm:$0xf] }
  0x38   : > { %v710_v44 = vrot.slane %v708_v30, 5  ;;  %v658_v46 = vsel %vm1779_vm2, %v653_v32, %v657_v29  ;;  %v706_v47 = vrot.slane %v705_v33, 4  ;;  %v733_v48 = vor.u32 %v732_v35, %v729_v34  ;;  %v1469_v3 = vld [vmem:[%s1764_s13 + $0x10] sm:$0xf]  ;;  %v1468_v7 = vld [vmem:[%s1764_s13 + $0x8] sm:$0xf] }
  0x39   : > { %580 = vrot.lane.b32.xlu1 %v571_v52, %s1666_s28  ;;  %v736_v49 = vshll.u32 %v683_v39, 16  ;;  %v644_v50 = vsel %vm1779_vm2, %v639_v37, %v643_v38  ;;  %v692_v51 = vrot.slane %v691_v40, 4  ;;  %v696_v52 = vrot.slane %v694_v41, 5  ;;  %v1482_v8 = vld [vmem:[%s1764_s13 + $0x18] sm:$0xf] }
  0x3a   : > { %v719_v53 = vor.u32 %v718_v43, %v715_v42  ;;  %v722_v54 = vshll.u32 %v681_v45, 16  ;;  %v711_v55 = vsel %vm1779_vm2, %v706_v47, %v710_v44  ;;  %v734_v56 = vrot.slane %v733_v48, 4  ;;  %v1471_v13 = vld [vmem:[%s1764_s13 + $0x20] sm:$0xf]  ;;  %v1481_v14 = vld [vmem:[%s1764_s13 + $0x14] sm:$0x1] }
  0x3b   : > { %578 = vrot.lane.b32.xlu0 %v570_v59, %s1666_s28  ;;  %v738_v57 = vrot.slane %v736_v49, 5  ;;  %v697_v58 = vsel %vm1779_vm2, %v692_v51, %v696_v52  ;;  %v836_v1 = vshrl.u32 %v1480_v62, 16  ;;  %v839_v2 = vshll.u32 %v1480_v62, 16  ;;  %v1479_v15 = vld [vmem:[%s1764_s13 + $0xc] sm:$0x1] }
  0x3c   : > { %v720_v59 = vrot.slane %v719_v53, 4  ;;  %v724_v60 = vrot.slane %v722_v54, 5  ;;  %v822_v5 = vshrl.u32 %v1478_v0, 16  ;;  %v825_v6 = vshll.u32 %v1478_v0, 16  ;;  %v1488_v20 = vld [vmem:[%s1761_s12 + $0x10] sm:$0xf] }
  0x3d   : > { %584 = vrot.lane.b32.xlu1 %v573_v4, %s1666_s28  ;;  %v739_v61 = vsel %vm1779_vm2, %v734_v56, %v738_v57  ;;  %v1484_v4 = vld [vmem:[%s1764_s13 + $0x20] sm:$0xf]  ;;  %v838_v9 = vrot.slane %v836_v1, 4  ;;  %v841_v10 = vrot.slane %v839_v2, 5  ;;  %v850_v18 = vshrl.u32 %v1482_v8, 16 }
  0x3e   : > { %v725_v63 = vsel %vm1779_vm2, %v720_v59, %v724_v60  ;;  %v864_v11 = vshrl.u32 %v1484_v4, 16  ;;  %v867_v12 = vshll.u32 %v1484_v4, 16  ;;  %v824_v16 = vrot.slane %v822_v5, 4  ;;  %v1470_v21 = vld [vmem:[%s1764_s13 + $0x18] sm:$0xf] }
  0x3f   : > { %582 = vrot.lane.b32.xlu0 %v572_v22, %s1666_s28  ;;  %v827_v17 = vrot.slane %v825_v6, 5  ;;  %v853_v19 = vshll.u32 %v1482_v8, 16  ;;  %v1475_v22 = vld [vmem:[%s1761_s12 + $0x10] sm:$0xf]  ;;  %v842_v23 = vor.u32 %v841_v10, %v838_v9  ;;  %v845_v24 = vshll.u32 %v1481_v14, 16 }
  0x40   : > { %v866_v25 = vrot.slane %v864_v11, 4  ;;  %v869_v26 = vrot.slane %v867_v12, 5  ;;  %v1474_v29 = vld [vmem:[%s1761_s12 + $0x8] sm:$0xf]  ;;  %v831_v30 = vshll.u32 %v1479_v15, 16  ;;  %v917_v32 = vshrl.u32 %v1488_v20, 16 }
  0x41   : > { %661 = vrot.lane.b32.xlu1 %v630_v28, %s1667_s29  ;;  %v1486_v28 = vld [vmem:[%s1761_s12 + $0x8] sm:$0xf]  ;;  %v1485_v31 = vld [vmem:[%s1764_s13 + $0x24] sm:$0x1]  ;;  %v920_v33 = vshll.u32 %v1488_v20, 16  ;;  %v828_v34 = vor.u32 %v827_v17, %v824_v16  ;;  %v855_v37 = vrot.slane %v853_v19, 5 }
  0x42   : > { %v1483_v35 = vld [vmem:[%s1764_s13 + $0x1c] sm:$0x1]  ;;  %v1492_v38 = vld [vmem:[%s1761_s12 + $0x20] sm:$0xf]  ;;  %v903_v40 = vshrl.u32 %v1486_v28, 16  ;;  %v906_v41 = vshll.u32 %v1486_v28, 16 }
  0x43   : > { %659 = vrot.lane.b32.xlu0 %v616_v36, %s1667_s29  ;;  %v852_v36 = vrot.slane %v850_v18, 4  ;;  %v1477_v39 = vld [vmem:[%s1761_s12 + $0x20] sm:$0xf]  ;;  %v342_v42 = vld [vmem:[%s1764_s13 + $0x10] sm:$0xf]  ;;  %v843_v44 = vrot.slane %v842_v23, 4 }
  0x44   : > { %v340_v43 = vld [vmem:[%s1764_s13] sm:$0xf]  ;;  %v847_v45 = vrot.slane %v845_v24, 5  ;;  %v873_v47 = vshll.u32 %v1485_v31, 16  ;;  %v1490_v48 = vld [vmem:[%s1761_s12 + $0x18] sm:$0xf] }
  0x45   : > { %665 = vrot.lane.b32.xlu1 %v658_v46, %s1667_s29  ;;  %v870_v46 = vor.u32 %v869_v26, %v866_v25  ;;  %347 = vst.msk [vmem:[#allocation2 + $0x8] sm:$0xf] %vm344_vm3, %v342_v42  ;;  %345 = vst.msk [vmem:[#allocation2] sm:$0xf] %vm344_vm3, %v340_v43  ;;  %v1489_v49 = vld [vmem:[%s1761_s12 + $0x14] sm:$0x1]  ;;  %v856_v57 = vor.u32 %v855_v37, %v852_v36 }
  0x46   : > { %v922_v51 = vrot.slane %v920_v33, 5  ;;  %v945_v52 = vshrl.u32 %v1492_v38, 16  ;;  %v948_v53 = vshll.u32 %v1492_v38, 16  ;;  %v1476_v54 = vld [vmem:[%s1761_s12 + $0x18] sm:$0xf]  ;;  %v833_v56 = vrot.slane %v831_v30, 5 }
  0x47   : > { %663 = vrot.lane.b32.xlu0 %v644_v50, %s1667_s29  ;;  %v919_v50 = vrot.slane %v917_v32, 4  ;;  %v1487_v59 = vld [vmem:[%s1761_s12 + $0xc] sm:$0x1]  ;;  %v905_v60 = vrot.slane %v903_v40, 4  ;;  %v931_v62 = vshrl.u32 %v1490_v48, 16  ;;  %v848_v0 = vsel %vm1779_vm2, %v843_v44, %v847_v45 }
  0x48   : > { %v875_v1 = vrot.slane %v873_v47, 5  ;;  %v926_v2 = vshll.u32 %v1489_v49, 16  ;;  %v871_v4 = vrot.slane %v870_v46, 4  ;;  %v947_v6 = vrot.slane %v945_v52, 4  ;;  %v341_v8 = vld [vmem:[%s1764_s13 + $0x8] sm:$0xf] }
  0x49   : > { %742 = vrot.lane.b32.xlu1 %v711_v55, %s1668_s11  ;;  %v829_v55 = vrot.slane %v828_v34, 4  ;;  %v923_v5 = vor.u32 %v922_v51, %v919_v50  ;;  %v912_v11 = vshll.u32 %v1487_v59, 16  ;;  %v1493_v12 = vld [vmem:[%s1761_s12 + $0x24] sm:$0x1]  ;;  %346 = vst.msk [vmem:[#allocation2 + $0x4] sm:$0xf] %vm344_vm3, %v341_v8 }
  0x4a   : > { %v933_v15 = vrot.slane %v931_v62, 4  ;;  %v928_v17 = vrot.slane %v926_v2, 5  ;;  %v1491_v18 = vld [vmem:[%s1761_s12 + $0x1c] sm:$0x1]  ;;  %v876_v19 = vsel %vm1779_vm2, %v871_v4, %v875_v1  ;;  %s1672_s12 = smov 44  }
  0x4b   : > { %740 = vrot.lane.b32.xlu0 %v697_v58, %s1668_s11  ;;  %v859_v58 = vshll.u32 %v1483_v35, 16  ;;  %v834_v9 = vsel %vm1779_vm2, %v829_v55, %v833_v56  ;;  %v924_v20 = vrot.slane %v923_v5, 4  ;;  %v914_v23 = vrot.slane %v912_v11, 5  ;;  %v1508_v36 = vld [vmem:[%s1809_s20 + $0x10] sm:$0xf] }
  0x4c   : > { %v940_v28 = vshll.u32 %v1491_v18, 16  ;;  %v1506_v38 = vld [vmem:[%s1809_s20 + $0x8] sm:$0xf]  ;;  %v1055_v40 = vshll.u32 %v1508_v36, 16  ;;  %v1512_v42 = vld [vmem:[%s1809_s20 + $0x20] sm:$0xf] }
  0x4d   : > { %746 = vrot.lane.b32.xlu1 %v739_v61, %s1668_s11  ;;  %v908_v61 = vrot.slane %v906_v41, 5  ;;  %v861_v10 = vrot.slane %v859_v58, 5  ;;  %v1497_v41 = vld [vmem:[%s1809_s20 + $0x10] sm:$0xf]  ;;  %v1038_v43 = vshrl.u32 %v1506_v38, 16  ;;  %v1041_v44 = vshll.u32 %v1506_v38, 16 }
  0x4e   : > { %v942_v34 = vrot.slane %v940_v28, 5  ;;  %v1496_v45 = vld [vmem:[%s1809_s20 + $0x8] sm:$0xf]  ;;  %v1510_v46 = vld [vmem:[%s1809_s20 + $0x18] sm:$0xf]  ;;  %v1080_v49 = vshrl.u32 %v1512_v42, 16 }
  0x4f   : > { %744 = vrot.lane.b32.xlu0 %v725_v63, %s1668_s11  ;;  %v934_v63 = vshll.u32 %v1490_v48, 16  ;;  %v909_v14 = vor.u32 %v908_v61, %v905_v60  ;;  %v1057_v48 = vrot.slane %v1055_v40, 5  ;;  %v1083_v50 = vshll.u32 %v1512_v42, 16  ;;  %v1499_v51 = vld [vmem:[%s1809_s20 + $0x20] sm:$0xf]  ;;  %v1617_v40 = vld [vmem:[%s2005_s4 + $0x8] sm:$0xff]  }
  0x50   : > { %v1509_v52 = vld [vmem:[%s1809_s20 + $0x14] sm:$0x1]  ;;  %v1066_v55 = vshrl.u32 %v1510_v46, 16  ;;  %v1069_v56 = vshll.u32 %v1510_v46, 16  ;;  %v1498_v58 = vld [vmem:[%s1809_s20 + $0x18] sm:$0xf] }
  0x51   : > { %771 = vrot.lane.b32.xlu1 %v1469_v3, %s1669_s14  ;;  %v343_v3 = vld [vmem:[%s1764_s13 + $0x18] sm:$0xf]  ;;  %v936_v16 = vrot.slane %v934_v63, 5  ;;  %v910_v25 = vrot.slane %v909_v14, 4  ;;  %s1673_s13 = smov 48   ;;  %v1061_v62 = vshll.u32 %v1509_v52, 16 }
  0x52   : > { %348 = vst.msk [vmem:[#allocation2 + $0xc] sm:$0xf] %vm344_vm3, %v343_v3  ;;  %v1503_v59 = vld [vmem:[%s1826_s10 + $0x10] sm:$0xf]  ;;  %v1507_v60 = vld [vmem:[%s1809_s20 + $0xc] sm:$0x1] }
  0x53   : > { %769 = vrot.lane.b32.xlu0 %v1468_v7, %s1669_s14  ;;  %v950_v7 = vrot.slane %v948_v53, 5  ;;  %v937_v26 = vor.u32 %v936_v16, %v933_v15  ;;  %v915_v32 = vsel %vm1779_vm2, %v910_v25, %v914_v23  ;;  %v1040_v53 = vrot.slane %v1038_v43, 4  ;;  %v1514_v1 = vld [vmem:[%s1826_s10 + $0x8] sm:$0xf]  ;;  %v1513_v3 = vld [vmem:[%s1809_s20 + $0x24] sm:$0x1] }
  0x54   : > { %v1082_v63 = vrot.slane %v1080_v49, 4  ;;  %v1502_v2 = vld [vmem:[%s1826_s10 + $0x8] sm:$0xf]  ;;  %v1068_v8 = vrot.slane %v1066_v55, 4  ;;  %v1505_v11 = vld [vmem:[%s1826_s10 + $0x20] sm:$0xf] }
  0x55   : > { %775 = vrot.lane.b32.xlu1 %v1471_v13, %s1669_s14  ;;  %v857_v13 = vrot.slane %v856_v57, 4  ;;  %v938_v33 = vrot.slane %v937_v26, 4  ;;  %v1516_v57 = vld [vmem:[%s1826_s10 + $0x10] sm:$0xf]  ;;  %v1122_v14 = vshll.u32 %v1514_v1, 16  ;;  %v1063_v16 = vrot.slane %v1061_v62, 5 }
  0x56   : > { %v1133_v4 = vshrl.u32 %v1516_v57, 16  ;;  %v1136_v5 = vshll.u32 %v1516_v57, 16  ;;  %v1089_v18 = vshll.u32 %v1513_v3, 16  ;;  %v1504_v26 = vld [vmem:[%s1826_s10 + $0x18] sm:$0xf]  ;;  %v1618_v55 = vld [vmem:[%s2005_s4 + $0x10] sm:$0xff]  }
  0x57   : > { %773 = vrot.lane.b32.xlu0 %v1470_v21, %s1669_s14  ;;  %v951_v21 = vor.u32 %v950_v7, %v947_v6  ;;  %v862_v24 = vsel %vm1779_vm2, %v857_v13, %v861_v10  ;;  %v943_v37 = vsel %vm1779_vm2, %v938_v33, %v942_v34  ;;  %v1047_v7 = vshll.u32 %v1507_v60, 16  ;;  %v1520_v10 = vld [vmem:[%s1826_s10 + $0x20] sm:$0xf]  ;;  %v1619_v60 = vld [vmem:[%s2005_s4 + $0x18] sm:$0xff]   ;;  %s1457_s11 = sshll.u32 %s1644_s21, 2  ;;  %s1458_s14 = sshll.u32 %s2021_s22, 3 }
  0x58   : > { %v1119_v13 = vshrl.u32 %v1514_v1, 16  ;;  %v1138_v23 = vrot.slane %v1136_v5, 5  ;;  %v1164_v25 = vshll.u32 %v1520_v10, 16  ;;  %v1124_v34 = vrot.slane %v1122_v14, 5  ;;  %p328_p6 = scmp.lt.s32.totalorder %s1457_s11, 7 }
  0x59   : > { %798 = vrot.lane.b32.xlu1 %v1475_v22, %s1670_s15  ;;  %v954_v22 = vshll.u32 %v1493_v12, 16  ;;  %v952_v30 = vrot.slane %v951_v21, 4  ;;  %v1511_v12 = vld [vmem:[%s1809_s20 + $0x1c] sm:$0x1]  ;;  %v1517_v21 = vld [vmem:[%s1826_s10 + $0x14] sm:$0x1] }
  0x5a   : > { %v1121_v33 = vrot.slane %v1119_v13, 4  ;;  %v1091_v38 = vrot.slane %v1089_v18, 5  ;;  %vm1244_vm3 = vcmask 523264   ;;  %s2023_s11 = smov (!%p328_p6, %s1457_s11), 7 }
  0x5b   : > { %796 = vrot.lane.b32.xlu0 %v1474_v29, %s1670_s15  ;;  %v929_v29 = vsel %vm1779_vm2, %v924_v20, %v928_v17  ;;  %v956_v31 = vrot.slane %v954_v22, 5  ;;  %v1616_v20 = vld [vmem:[%s2005_s4] sm:$0xff]   ;;  %v1135_v22 = vrot.slane %v1133_v4, 4 }
  0x5c   : > { %1548 = vmatprep.subr.bf16.mxu0 %v1616_v20 }
  0x5d   : > { %802 = vrot.lane.b32.xlu1 %v1477_v39, %s1670_s15  ;;  %v957_v35 = vsel %vm1779_vm2, %v952_v30, %v956_v31  ;;  %v1052_v39 = vshrl.u32 %v1508_v36, 16  ;;  %v1075_v31 = vshll.u32 %v1511_v12, 16  ;;  %1549 = vmatpush3.bf16.msra.mxu0 %v1616_v20  ;;  %v1139_v42 = vor.u32 %v1138_v23, %v1135_v22 }
  0x5e   : > { %1550 = vmatprep.subr.bf16.mxu0 %v1617_v40 }
  0x5f   : > { %800 = vrot.lane.b32.xlu0 %v1476_v54, %s1670_s15  ;;  %v1054_v47 = vrot.slane %v1052_v39, 4  ;;  %v1043_v54 = vrot.slane %v1041_v44, 5  ;;  %v1142_v39 = vshll.u32 %v1517_v21, 16  ;;  %v1166_v44 = vrot.slane %v1164_v25, 5  ;;  %s331_s15 = sadd.s32 %s1458_s14, %s2023_s11 }
  0x60   : > { %v1077_v46 = vrot.slane %v1075_v31, 5  ;;  %v1140_v57 = vrot.slane %v1139_v42, 4 }
  0x61   : > { %879 = vrot.lane.b32.xlu1 %v848_v0, %s1671_s16  ;;  %v1058_v61 = vor.u32 %v1057_v48, %v1054_v47  ;;  %v1085_v0 = vrot.slane %v1083_v50, 5  ;;  %v1044_v6 = vor.u32 %v1043_v54, %v1040_v53  ;;  %v1521_v48 = vld [vmem:[%s1826_s10 + $0x24] sm:$0x1]  ;;  %v1125_v50 = vor.u32 %v1124_v34, %v1121_v33  ;;  %1551 = vmatpush3.bf16.msra.mxu0 %v1617_v40  ;;  %v1519_v54 = vld [vmem:[%s1826_s10 + $0x1c] sm:$0x1] }
  0x62   : > { %v1144_v53 = vrot.slane %v1142_v39, 5  ;;  %1552 = vmatprep.subr.bf16.mxu0 %v1618_v55  ;;  %v1156_v1 = vshll.u32 %v1519_v54, 16 }
  0x63   : > { %877 = vrot.lane.b32.xlu0 %v834_v9, %s1671_s16  ;;  %v1071_v9 = vrot.slane %v1069_v56, 5  ;;  %v1059_v15 = vrot.slane %v1058_v61, 4  ;;  %v1086_v17 = vor.u32 %v1085_v0, %v1082_v63  ;;  %v1045_v28 = vrot.slane %v1044_v6, 4 }
  0x64   : > { %v1126_v63 = vrot.slane %v1125_v50, 4 }
  0x65   : > { %883 = vrot.lane.b32.xlu1 %v876_v19, %s1671_s16  ;;  %v1518_v19 = vld [vmem:[%s1826_s10 + $0x18] sm:$0xf]  ;;  %v1072_v30 = vor.u32 %v1071_v9, %v1068_v8  ;;  %1553 = vmatpush3.bf16.msra.mxu0 %v1618_v55  ;;  %v1158_v9 = vrot.slane %v1156_v1, 5 }
  0x66   : > { %v1150_v36 = vshll.u32 %v1518_v19, 16  ;;  %1554 = vmatprep.subr.bf16.mxu0 %v1619_v60 }
  0x67   : > { %881 = vrot.lane.b32.xlu0 %v862_v24, %s1671_s16  ;;  %v1161_v24 = vshrl.u32 %v1520_v10, 16  ;;  %v1073_v49 = vrot.slane %v1072_v30, 4  ;;  %s1459_s16 = sshll.u32 %s331_s15, 3 }
  0x68   : > { %v1152_v52 = vrot.slane %v1150_v36, 5  ;;  %s333_s19 = scalar_lea.vmem %s2007_s6, %s1459_s16 }
  0x69   : > { %960 = vrot.lane.b32.xlu1 %v929_v29, %s1672_s12  ;;  %v1049_v29 = vrot.slane %v1047_v7, 5  ;;  %v1163_v43 = vrot.slane %v1161_v24, 4  ;;  %v1078_v62 = vsel %vm1779_vm2, %v1073_v49, %v1077_v46  ;;  %1555 = vmatpush3.bf16.msra.mxu0 %v1619_v60 }
  0x6b   : > { %958 = vrot.lane.b32.xlu0 %v915_v32, %s1672_s12  ;;  %v1515_v32 = vld [vmem:[%s1826_s10 + $0xc] sm:$0x1]  ;;  %s1676_s10 = smov 60  }
  0x6c   : > { %v1128_v47 = vshll.u32 %v1515_v32, 16 }
  0x6d   : > { %964 = vrot.lane.b32.xlu1 %v957_v35, %s1672_s12  ;;  %v1147_v35 = vshrl.u32 %v1518_v19, 16 }
  0x6e   : > { %v1130_v61 = vrot.slane %v1128_v47, 5 }
  0x6f   : > { %962 = vrot.lane.b32.xlu0 %v943_v37, %s1672_s12  ;;  %v1064_v37 = vsel %vm1779_vm2, %v1059_v15, %v1063_v16 }
  0x70   : > { %v1131_v5 = vsel %vm1779_vm2, %v1126_v63, %v1130_v61 }
  0x71   : > { %987 = vrot.lane.b32.xlu1 %v1497_v41, %s1673_s13  ;;  %v1087_v41 = vrot.slane %v1086_v17, 4 }
  0x73   : > { %985 = vrot.lane.b32.xlu0 %v1496_v45, %s1673_s13  ;;  %v1050_v45 = vsel %vm1779_vm2, %v1045_v28, %v1049_v29  ;;  %v1092_v56 = vsel %vm1779_vm2, %v1087_v41, %v1091_v38 }
  0x75   : > { %991 = vrot.lane.b32.xlu1 %v1499_v51, %s1673_s13  ;;  %v1149_v51 = vrot.slane %v1147_v35, 4 }
  0x77   : > { %989 = vrot.lane.b32.xlu0 %v1498_v58, %s1673_s13  ;;  %v1167_v58 = vor.u32 %v1166_v44, %v1163_v43  ;;  %v1153_v0 = vor.u32 %v1152_v52, %v1149_v51 }
  0x79   : > { %1014 = vrot.lane.b32.xlu1 %v1503_v59, %s1674_s17  ;;  %v1170_v59 = vshll.u32 %v1521_v48, 16  ;;  %v1168_v3 = vrot.slane %v1167_v58, 4  ;;  %v1154_v8 = vrot.slane %v1153_v0, 4 }
  0x7b   : > { %1012 = vrot.lane.b32.xlu0 %v1502_v2, %s1674_s17  ;;  %v1145_v2 = vsel %vm1779_vm2, %v1140_v57, %v1144_v53  ;;  %v1172_v4 = vrot.slane %v1170_v59, 5 }
  0x7d   : > { %1018 = vrot.lane.b32.xlu1 %v1505_v11, %s1674_s17  ;;  %v1173_v10 = vsel %vm1779_vm2, %v1168_v3, %v1172_v4  ;;  %v1159_v11 = vsel %vm1779_vm2, %v1154_v8, %v1158_v9  ;;  %vm1186_vm2 = vcmask 519648   ;;  %v1522_v8 = vld [vmem:[%s2006_s5] ss:$0 sm:$0xff] }
  0x7f   : > { %1016 = vrot.lane.b32.xlu0 %v1504_v26, %s1674_s17 }
  0x81   : > { %1095 = vrot.lane.b32.xlu1 %v1064_v37, %s1675_s7 }
  0x83   : > { %1093 = vrot.lane.b32.xlu0 %v1050_v45, %s1675_s7 }
  0x85   : > { %1099 = vrot.lane.b32.xlu1 %v1092_v56, %s1675_s7 }
  0x87   : > { %1097 = vrot.lane.b32.xlu0 %v1078_v62, %s1675_s7 }
  0x88   : > { %v364_v6 = vpop.permute.xlu1 %363  ;;  %v360_v7 = vpop.permute.xlu0 %359 }
  0x89   : > { %1176 = vrot.lane.b32.xlu1 %v1145_v2, %s1676_s10  ;;  %374 = vst.msk [vmem:[#allocation2 + $0x8] sm:$0xf] %vm371_vm4, %v364_v6  ;;  %372 = vst.msk [vmem:[#allocation2] sm:$0xf] %vm371_vm4, %v360_v7 }
  0x8b   : > { %1174 = vrot.lane.b32.xlu0 %v1131_v5, %s1676_s10 }
  0x8c   : > { %v366_v12 = vpop.permute.xlu1 %365  ;;  %v362_v13 = vpop.permute.xlu0 %361 }
  0x8d   : > { %1180 = vrot.lane.b32.xlu1 %v1173_v10, %s1676_s10  ;;  %375 = vst.msk [vmem:[#allocation2 + $0xc] sm:$0xf] %vm371_vm4, %v366_v12  ;;  %373 = vst.msk [vmem:[#allocation2 + $0x4] sm:$0xf] %vm371_vm4, %v362_v13 }
  0x8f   : > { %1178 = vrot.lane.b32.xlu0 %v1159_v11, %s1676_s10 }
  0x93   : > { %v446_v14 = vpop.permute.xlu1 %445  ;;  %v444_v15 = vpop.permute.xlu0 %443 }
  0x94   : > { %457 = vst.msk [vmem:[#allocation2 + $0x4] sm:$0xf] %vm455_vm5, %v446_v14  ;;  %456 = vst.msk [vmem:[#allocation2] sm:$0xf] %vm455_vm5, %v444_v15 }
  0x97   : > { %v450_v16 = vpop.permute.xlu1 %449  ;;  %v448_v17 = vpop.permute.xlu0 %447 }
  0x98   : > { %459 = vst.msk [vmem:[#allocation2 + $0xc] sm:$0xf] %vm455_vm5, %v450_v16  ;;  %458 = vst.msk [vmem:[#allocation2 + $0x8] sm:$0xf] %vm455_vm5, %v448_v17 }
  0x9b   : > { %v527_v27 = vpop.permute.xlu1 %526 }
  0x9c   : > { %538 = vst.msk [vmem:[#allocation2 + $0x4] sm:$0xf] %vm536_vm6, %v527_v27 }
  0x9d   : > { %v525_v18 = vpop.permute.xlu0 %524 }
  0x9e   : > { %537 = vst.msk [vmem:[#allocation2] sm:$0xf] %vm536_vm6, %v525_v18 }
  0x9f   : > { %v531_v19 = vpop.permute.xlu1 %530 }
  0xa0   : > { %540 = vst.msk [vmem:[#allocation2 + $0xc] sm:$0xf] %vm536_vm6, %v531_v19 }
  0xa1   : > { %v529_v20 = vpop.permute.xlu0 %528 }
  0xa2   : > { %539 = vst.msk [vmem:[#allocation2 + $0x8] sm:$0xf] %vm536_vm6, %v529_v20 }
  0xa3   : > { %v554_v21 = vpop.permute.xlu1 %553 }
  0xa4   : > { %565 = vst.msk [vmem:[#allocation2 + $0x4] sm:$0xf] %vm563_vm7, %v554_v21 }
  0xa5   : > { %v552_v22 = vpop.permute.xlu0 %551 }
  0xa6   : > { %564 = vst.msk [vmem:[#allocation2] sm:$0xf] %vm563_vm7, %v552_v22 }
  0xa7   : > { %v558_v23 = vpop.permute.xlu1 %557 }
  0xa8   : > { %567 = vst.msk [vmem:[#allocation2 + $0xc] sm:$0xf] %vm563_vm7, %v558_v23 }
  0xa9   : > { %v556_v24 = vpop.permute.xlu0 %555 }
  0xaa   : > { %566 = vst.msk [vmem:[#allocation2 + $0x8] sm:$0xf] %vm563_vm7, %v556_v24 }
  0xab   : > { %v581_v25 = vpop.permute.xlu1 %580 }
  0xac   : > { %592 = vst.msk [vmem:[#allocation2 + $0x4] sm:$0xf] %vm590_vm8, %v581_v25 }
  0xad   : > { %v579_v26 = vpop.permute.xlu0 %578 }
  0xae   : > { %591 = vst.msk [vmem:[#allocation2] sm:$0xf] %vm590_vm8, %v579_v26 }
  0xaf   : > { %v585_v28 = vpop.permute.xlu1 %584 }
  0xb0   : > { %594 = vst.msk [vmem:[#allocation2 + $0xc] sm:$0xf] %vm590_vm8, %v585_v28 }
  0xb1   : > { %v583_v29 = vpop.permute.xlu0 %582 }
  0xb2   : > { %593 = vst.msk [vmem:[#allocation2 + $0x8] sm:$0xf] %vm590_vm8, %v583_v29 }
  0xb3   : > { %v662_v30 = vpop.permute.xlu1 %661 }
  0xb4   : > { %673 = vst.msk [vmem:[#allocation2 + $0x4] sm:$0xf] %vm671_vm9, %v662_v30 }
  0xb5   : > { %v660_v31 = vpop.permute.xlu0 %659 }
  0xb6   : > { %672 = vst.msk [vmem:[#allocation2] sm:$0xf] %vm671_vm9, %v660_v31 }
  0xb7   : > { %v666_v32 = vpop.permute.xlu1 %665 }
  0xb8   : > { %675 = vst.msk [vmem:[#allocation2 + $0xc] sm:$0xf] %vm671_vm9, %v666_v32 }
  0xb9   : > { %v664_v33 = vpop.permute.xlu0 %663 }
  0xba   : > { %674 = vst.msk [vmem:[#allocation2 + $0x8] sm:$0xf] %vm671_vm9, %v664_v33 }
  0xbb   : > { %v743_v34 = vpop.permute.xlu1 %742 }
  0xbc   : > { %754 = vst.msk [vmem:[#allocation2 + $0x4] sm:$0xf] %vm752_vm10, %v743_v34 }
  0xbd   : > { %v741_v35 = vpop.permute.xlu0 %740 }
  0xbe   : > { %753 = vst.msk [vmem:[#allocation2] sm:$0xf] %vm752_vm10, %v741_v35 }
  0xbf   : > { %v747_v36 = vpop.permute.xlu1 %746 }
  0xc0   : > { %756 = vst.msk [vmem:[#allocation2 + $0xc] sm:$0xf] %vm752_vm10, %v747_v36 }
  0xc1   : > { %v745_v37 = vpop.permute.xlu0 %744 }
  0xc2   : > { %755 = vst.msk [vmem:[#allocation2 + $0x8] sm:$0xf] %vm752_vm10, %v745_v37 }
  0xc3   : > { %v772_v38 = vpop.permute.xlu1 %771 }
  0xc4   : > { %783 = vst.msk [vmem:[#allocation2 + $0x4] sm:$0xf] %vm781_vm11, %v772_v38 }
  0xc5   : > { %v770_v39 = vpop.permute.xlu0 %769 }
  0xc6   : > { %782 = vst.msk [vmem:[#allocation2] sm:$0xf] %vm781_vm11, %v770_v39 }
  0xc7   : > { %v776_v40 = vpop.permute.xlu1 %775 }
  0xc8   : > { %785 = vst.msk [vmem:[#allocation2 + $0xc] sm:$0xf] %vm781_vm11, %v776_v40 }
  0xc9   : > { %v774_v41 = vpop.permute.xlu0 %773 }
  0xca   : > { %784 = vst.msk [vmem:[#allocation2 + $0x8] sm:$0xf] %vm781_vm11, %v774_v41 }
  0xcb   : > { %v799_v42 = vpop.permute.xlu1 %798 }
  0xcc   : > { %810 = vst.msk [vmem:[#allocation2 + $0x4] sm:$0xf] %vm808_vm12, %v799_v42 }
  0xcd   : > { %v797_v43 = vpop.permute.xlu0 %796 }
  0xce   : > { %809 = vst.msk [vmem:[#allocation2] sm:$0xf] %vm808_vm12, %v797_v43 }
  0xcf   : > { %v803_v44 = vpop.permute.xlu1 %802 }
  0xd0   : > { %812 = vst.msk [vmem:[#allocation2 + $0xc] sm:$0xf] %vm808_vm12, %v803_v44 }
  0xd1   : > { %v801_v45 = vpop.permute.xlu0 %800 }
  0xd2   : > { %811 = vst.msk [vmem:[#allocation2 + $0x8] sm:$0xf] %vm808_vm12, %v801_v45 }
  0xd3   : > { %v880_v46 = vpop.permute.xlu1 %879 }
  0xd4   : > { %891 = vst.msk [vmem:[#allocation2 + $0x4] sm:$0xf] %vm889_vm13, %v880_v46 }
  0xd5   : > { %v878_v47 = vpop.permute.xlu0 %877 }
  0xd6   : > { %890 = vst.msk [vmem:[#allocation2] sm:$0xf] %vm889_vm13, %v878_v47 }
  0xd7   : > { %v884_v48 = vpop.permute.xlu1 %883 }
  0xd8   : > { %893 = vst.msk [vmem:[#allocation2 + $0xc] sm:$0xf] %vm889_vm13, %v884_v48 }
  0xd9   : > { %v882_v49 = vpop.permute.xlu0 %881 }
  0xda   : > { %892 = vst.msk [vmem:[#allocation2 + $0x8] sm:$0xf] %vm889_vm13, %v882_v49 }
  0xdb   : > { %v961_v50 = vpop.permute.xlu1 %960 }
  0xdc   : > { %972 = vst.msk [vmem:[#allocation2 + $0x4] sm:$0xf] %vm970_vm14, %v961_v50 }
  0xdd   : > { %v959_v51 = vpop.permute.xlu0 %958 }
  0xde   : > { %971 = vst.msk [vmem:[#allocation2] sm:$0xf] %vm970_vm14, %v959_v51 }
  0xdf   : > { %v965_v52 = vpop.permute.xlu1 %964 }
  0xe0   : > { %974 = vst.msk [vmem:[#allocation2 + $0xc] sm:$0xf] %vm970_vm14, %v965_v52 }
  0xe1   : > { %v963_v53 = vpop.permute.xlu0 %962 }
  0xe2   : > { %973 = vst.msk [vmem:[#allocation2 + $0x8] sm:$0xf] %vm970_vm14, %v963_v53 }
  0xe3   : > { %v988_v54 = vpop.permute.xlu1 %987 }
  0xe4   : > { %999 = vst.msk [vmem:[#allocation2 + $0x4] sm:$0xf] %vm997_vm15, %v988_v54 }
  0xe5   : > { %v986_v55 = vpop.permute.xlu0 %985 }
  0xe6   : > { %998 = vst.msk [vmem:[#allocation2] sm:$0xf] %vm997_vm15, %v986_v55 }
  0xe7   : > { %v992_v56 = vpop.permute.xlu1 %991 }
  0xe8   : > { %1001 = vst.msk [vmem:[#allocation2 + $0xc] sm:$0xf] %vm997_vm15, %v992_v56 }
  0xe9   : > { %v990_v57 = vpop.permute.xlu0 %989 }
  0xea   : > { %1000 = vst.msk [vmem:[#allocation2 + $0x8] sm:$0xf] %vm997_vm15, %v990_v57 }
  0xeb   : > { %v1015_v58 = vpop.permute.xlu1 %1014 }
  0xec   : > { %1026 = vst.msk [vmem:[#allocation2 + $0x4] sm:$0xf] %vm1024_vm0, %v1015_v58 }
  0xed   : > { %v1013_v59 = vpop.permute.xlu0 %1012 }
  0xee   : > { %1025 = vst.msk [vmem:[#allocation2] sm:$0xf] %vm1024_vm0, %v1013_v59 }
  0xef   : > { %v1019_v60 = vpop.permute.xlu1 %1018 }
  0xf0   : > { %1028 = vst.msk [vmem:[#allocation2 + $0xc] sm:$0xf] %vm1024_vm0, %v1019_v60 }
  0xf1   : > { %v1017_v61 = vpop.permute.xlu0 %1016 }
  0xf2   : > { %1027 = vst.msk [vmem:[#allocation2 + $0x8] sm:$0xf] %vm1024_vm0, %v1017_v61 }
  0xf3   : > { %v1096_v62 = vpop.permute.xlu1 %1095 }
  0xf4   : > { %1107 = vst.msk [vmem:[#allocation2 + $0x4] sm:$0xf] %vm1105_vm1, %v1096_v62 }
  0xf5   : > { %v1094_v63 = vpop.permute.xlu0 %1093 }
  0xf6   : > { %1106 = vst.msk [vmem:[#allocation2] sm:$0xf] %vm1105_vm1, %v1094_v63 }
  0xf7   : > { %v1100_v0 = vpop.permute.xlu1 %1099 }
  0xf8   : > { %1109 = vst.msk [vmem:[#allocation2 + $0xc] sm:$0xf] %vm1105_vm1, %v1100_v0 }
  0xf9   : > { %v1098_v1 = vpop.permute.xlu0 %1097 }
  0xfa   : > { %1108 = vst.msk [vmem:[#allocation2 + $0x8] sm:$0xf] %vm1105_vm1, %v1098_v1 }
  0xfb   : > { %v1177_v2 = vpop.permute.xlu1 %1176 }
  0xfc   : > { %1188 = vst.msk [vmem:[#allocation2 + $0x4] sm:$0xf] %vm1186_vm2, %v1177_v2 }
  0xfd   : > { %v1175_v3 = vpop.permute.xlu0 %1174 }
  0xfe   : > { %1187 = vst.msk [vmem:[#allocation2] sm:$0xf] %vm1186_vm2, %v1175_v3 }
  0xff   : > { %v1181_v4 = vpop.permute.xlu1 %1180 }
 0x100   : > { %1190 = vst.msk [vmem:[#allocation2 + $0xc] sm:$0xf] %vm1186_vm2, %v1181_v4 }
 0x101   : > { %v1179_v5 = vpop.permute.xlu0 %1178 }
 0x102   : > { %1189 = vst.msk [vmem:[#allocation2 + $0x8] sm:$0xf] %vm1186_vm2, %v1179_v5 }
 0x105   : > { %v1620_v6 = vld [vmem:[#allocation2] sm:$0xff]  }
 0x106   : > { %1556 = vmatprep.mubr.msk.bf16.mxu0 %vm1244_vm3, %v1620_v6 }
 0x109   : > { %v1621_v7 = vld [vmem:[#allocation2 + $0x8] sm:$0xff]  }
 0x10a   : > { %1557 = vmatmul.mubr.msk.bf16.vlgmr.msra.gmra.mrb[0].mxu0 %vm1244_vm3, %v1621_v7 }
 0x1dd   : > { %v1558_v9 = vpop.f32.mrb[0].mxu0 }
 0x1de   : > { %v1294_v10 = vadd.f32 %v1558_v9, %v1522_v8  ;;  %v1285_v11 = vpop.f32.mrb[1].mxu0 }
 0x1df   : > { %v1286_v12 = vadd.f32 %v1522_v8, %v1285_v11  ;;  %v1559_v13 = vpop.f32.mrb[2].mxu0 }
 0x1e0   : > { %1302 = vst [vmem:[%s333_s19 + $0x10] sm:$0xff] %v1294_v10  ;;  %v1297_v14 = vadd.f32 %v1559_v13, %v1522_v8  ;;  %v1288_v15 = vpop.f32.mrb[3].mxu0 }
 0x1e1   : > { %1300 = vst [vmem:[%s333_s19] sm:$0xff] %v1286_v12  ;;  %v1289_v16 = vadd.f32 %v1522_v8, %v1288_v15 }
 0x1e2   : > { %1303 = vst [vmem:[%s333_s19 + $0x18] sm:$0xff] %v1297_v14 }
 0x1e3   : > { %1301 = vst [vmem:[%s333_s19 + $0x8] sm:$0xff] %v1289_v16 }
 0x1e4 PF: > { %s16_s25 = sadd.s32 1, %s1660_s25   ;;  %s2010_s21 = smov %s1652_s23 }
 0x1e5   : > { %p13_p7 = scmp.ge.s32.totalorder %s16_s25, 6   ;;  %s2011_s22 = smov %s1656_s24 }
 0x1e6   : > { %s2012_s23 = smov %s2015_s26  ;;  %s2013_s24 = smov %s2019_s27 }
 0x1e7   :  { %15 = sbr.rel (!%p13_p7) target bundleno = 3 (0x3), region = 91 }

</bundles_post_ra>
